<compile_context>
chip_gen: v7x
topology: tpu7x:2x2x1
jax: 0.10.0
libtpu: 0.0.40
codegen_flags: <defaults>
</compile_context>

<pallas_src>
import jax
import jax.numpy as jnp
from jax.experimental import pallas as pl
from jax.experimental.pallas import tpu as pltpu

# ---------------- config (small shapes consistent with the module) ----------------
VOCAB = 50
HIDDEN = 16                # word_hidden_size
EMB = 2 * HIDDEN           # word_emb_size (== 2H, required by the .mul with query_emb)
B, S, W = 2, 3, 8          # batch, sentences, words-per-sentence
N = B * S
NPAD = ((N + 7) // 8) * 8  # pad batch*sentences to a sublane multiple
NUM_Q = 5
NUM_HEADS = NUM_Q + 1      # 6 real attention heads (att_net + 5 query heads)
HEADS_PAD = 8              # padded head count (256 attention lanes, 8-lane logits)


# ------------------------ fused bi-GRU + attention kernel --------------------------
def fused_word_att_kernel(x_ref, wi_ref, bi_ref, wh_ref, bhn_ref,
                          watt_ref, batt_ref, vq_ref, sel_ref, headw_ref,
                          out_ref, gru_ref):
    w_steps, n, e2 = x_ref.shape
    h_dim = bhn_ref.shape[1] // 2
    d2 = 2 * h_dim
    g6 = wi_ref.shape[1]                 # 6H: 2 directions x 3 gates
    heads_pad = sel_ref.shape[1]

    # ---- hoisted input projection: one bf16 (W*N, 2E) @ (2E, 6H) matmul for both
    #      directions and all timesteps (bwd half of x_cat is time-reversed host-side) ----
    x_flat = x_ref[...].reshape(w_steps * n, e2)
    xp = jnp.dot(x_flat, wi_ref[...], preferred_element_type=jnp.float32) + bi_ref[...]
    xp = xp.reshape(w_steps, n, g6)      # kept as a value (no scratch round-trip)

    wh = wh_ref[...]                                     # (2H, 6H) bf16, block-diagonal
    bhn = jnp.broadcast_to(bhn_ref[...], (n, d2))        # hoisted b_hn broadcast

    # ---- merged fwd/bwd recurrence: ONE h@Wh per step, statically unrolled (W=8) ----
    # gate lane order: r_f | r_b | z_f | z_b | n_f | n_b
    h = jnp.zeros((n, d2), jnp.float32)                  # [h_fwd | h_bwd]
    for t in range(w_steps):
        tb = w_steps - 1 - t
        xi = xp[t]                                       # (N, 6H), static slice
        hh = jnp.dot(h.astype(jnp.bfloat16), wh, preferred_element_type=jnp.float32)
        rz = jax.nn.sigmoid(xi[:, :2 * d2] + hh[:, :2 * d2])   # r_fb | z_fb
        r = rz[:, :d2]
        z = rz[:, d2:]
        ntil = jnp.tanh(xi[:, 2 * d2:] + r * (hh[:, 2 * d2:] + bhn))
        h = (1.0 - z) * ntil + z * h
        gru_ref[t, :, :h_dim] = h[:, :h_dim]             # fwd output at time t
        gru_ref[tb, :, h_dim:] = h[:, h_dim:]            # bwd output at time W-1-t
    out_ref[:, d2:] = h                                  # final hidden [fwd_last | bwd_last]

    # ---- 6 attention heads (padded to 8), all sentences & words batched ----
    frag = gru_ref[...]                                  # (W, N, 2H), single contiguous read
    frag_flat = frag.reshape(w_steps * n, d2)
    h_att = jnp.tanh(
        jnp.dot(frag_flat.astype(jnp.bfloat16), watt_ref[...],
                preferred_element_type=jnp.float32) + batt_ref[...])   # (W*N, 8*2H)
    logits = jnp.dot((h_att * vq_ref[...]).astype(jnp.bfloat16), sel_ref[...],
                     preferred_element_type=jnp.float32)                # (W*N, 8)
    logits = logits.reshape(w_steps, n, heads_pad)

    # softmax over the word axis (per sentence, per head); padded heads masked out below
    m = jnp.max(logits, axis=0, keepdims=True)
    e_l = jnp.exp(logits - m)
    inv = pl.reciprocal(jnp.sum(e_l, axis=0, keepdims=True), approx=True)
    alpha = e_l * inv                                    # (W, N, 8)
    # headw = 1/6 for real heads, 0 for padding -> mean over the 6 real heads only
    alpha_mean = jnp.sum(alpha * headw_ref[...], axis=-1)               # (W, N)

    out_ref[:, :d2] = jnp.sum(alpha_mean[:, :, None] * frag, axis=0)    # sentence vectors


def run_fused(x_cat, vqflat, p):
    w_steps, npad, _ = x_cat.shape
    h = HIDDEN
    vmem = pl.BlockSpec(memory_space=pltpu.MemorySpace.VMEM)
    # TODO(synk): for realistic batch sizes on v7x, add a "parallel" grid axis over NPAD
    # row-blocks (recurrence is over W, not N) so both TensorCores are used; at this toy
    # size a single program is fastest on every generation.
    return pl.pallas_call(
        fused_word_att_kernel,
        out_shape=jax.ShapeDtypeStruct((npad, 4 * h), jnp.float32),
        in_specs=[vmem] * 10,
        out_specs=vmem,
        scratch_shapes=[pltpu.VMEM((w_steps, npad, 2 * h), jnp.float32)],  # GRU outputs
    )(x_cat, p["wi_bd"], p["bi"], p["wh_bd"], p["bhn"],
      p["watt"], p["batt"], vqflat, p["sel"], p["headw"])


# ------------------------- deterministic parameter init ---------------------------
def init_params():
    key = jax.random.PRNGKey(0)
    ks = jax.random.split(key, 32)
    it = iter(range(32))

    def rnd(shape, scale=0.1):
        return scale * jax.random.normal(ks[next(it)], shape, dtype=jnp.float32)

    H = HIDDEN
    d2 = 2 * H
    p = {}
    p["emb"] = rnd((VOCAB, EMB))

    # GRU weights in PyTorch layout (gates stacked r, z, n), fwd & reverse direction.
    wih = [rnd((3 * H, EMB)) for _ in range(2)]
    whh = [rnd((3 * H, H)) for _ in range(2)]
    bih = [rnd((3 * H,)) for _ in range(2)]
    bhh = [rnd((3 * H,)) for _ in range(2)]

    # Fused block-diagonal layouts, gate lane order r_f | r_b | z_f | z_b | n_f | n_b.
    wi_bd = jnp.zeros((2 * EMB, 6 * H), jnp.float32)     # rows [x_t | x_{W-1-t}]
    wh_bd = jnp.zeros((2 * H, 6 * H), jnp.float32)       # rows [h_fwd | h_bwd]
    bi = jnp.zeros((6 * H,), jnp.float32)
    bhn = jnp.zeros((2 * H,), jnp.float32)
    for d in range(2):                                   # 0 = fwd, 1 = bwd
        for g in range(3):                               # 0 = r, 1 = z, 2 = n
            col = slice((2 * g + d) * H, (2 * g + d + 1) * H)
            wi_bd = wi_bd.at[d * EMB:(d + 1) * EMB, col].set(wih[d][g * H:(g + 1) * H].T)
            wh_bd = wh_bd.at[d * H:(d + 1) * H, col].set(whh[d][g * H:(g + 1) * H].T)
            bias = bih[d][g * H:(g + 1) * H]
            if g < 2:                                    # fold b_hr / b_hz into input bias
                bias = bias + bhh[d][g * H:(g + 1) * H]
            bi = bi.at[col].set(bias)
        bhn = bhn.at[d * H:(d + 1) * H].set(bhh[d][2 * H:3 * H])   # b_hn stays separate
    p["wi_bd"] = wi_bd.astype(jnp.bfloat16)
    p["wh_bd"] = wh_bd.astype(jnp.bfloat16)
    p["bi"] = bi.reshape(1, 6 * H)
    p["bhn"] = bhn.reshape(1, 2 * H)

    # att_net: Linear(2H,2H)+Tanh+Linear(2H,1,no bias); att_net_1..5: Linear(2H,2H)+Tanh
    wa = rnd((d2, d2))
    ba = rnd((d2,))
    v = rnd((1, d2))
    wq = [rnd((d2, d2)) for _ in range(NUM_Q)]
    bq = [rnd((d2,)) for _ in range(NUM_Q)]

    # Head block padded 6 -> 8 (zero weights for padded heads).
    watt = jnp.zeros((d2, HEADS_PAD * d2), jnp.float32)
    batt = jnp.zeros((HEADS_PAD * d2,), jnp.float32)
    sel = jnp.zeros((HEADS_PAD * d2, HEADS_PAD), jnp.float32)
    heads_w = [wa] + wq
    heads_b = [ba] + bq
    for k in range(NUM_HEADS):
        watt = watt.at[:, k * d2:(k + 1) * d2].set(heads_w[k].T)
        batt = batt.at[k * d2:(k + 1) * d2].set(heads_b[k])
        sel = sel.at[k * d2:(k + 1) * d2, k].set(1.0)
    p["watt"] = watt.astype(jnp.bfloat16)
    p["batt"] = batt.reshape(1, HEADS_PAD * d2)
    p["sel"] = sel.astype(jnp.bfloat16)
    p["v"] = v                                           # att_net's final (1, 2H) weight

    # per-head averaging weights: 1/6 for real heads, 0 for padded heads
    headw = jnp.zeros((1, HEADS_PAD), jnp.float32)
    headw = headw.at[0, :NUM_HEADS].set(1.0 / NUM_HEADS)
    p["headw"] = headw
    return p


# ----------------------------------- forward --------------------------------------
def word_att_net_forward(input_ids, query_ids, params):
    b, s, w = input_ids.shape
    n = b * s
    emb_table = params["emb"]

    # embedding lookup (glue); pad N -> NPAD; time-major; append time-reversed copy so
    # the kernel's fused projection covers both GRU directions in one matmul.
    x = jnp.take(emb_table, input_ids, axis=0).astype(jnp.float32)      # (B, S, W, E)
    x = x.reshape(n, w, EMB)
    x = jnp.pad(x, ((0, NPAD - n), (0, 0), (0, 0)))
    x_tm = jnp.transpose(x, (1, 0, 2))                                  # (W, NPAD, E)
    x_cat = jnp.concatenate([x_tm, x_tm[::-1]], axis=-1).astype(jnp.bfloat16)  # (W, NPAD, 2E)

    # query embeddings: mean of token embeddings (glue; plain gather + mean)
    q_list = []
    for key_ in sorted(query_ids.keys()):
        q_emb = jnp.take(emb_table, query_ids[key_], axis=0)            # (L_i, E)
        q_list.append(jnp.sum(q_emb, axis=0) / q_emb.shape[0])          # (E,) == (2H,)
    # head "dot vectors": [att_net final weight, query_emb 1..5, zero pad] -> (1, 8*2H)
    vqflat = jnp.concatenate([params["v"].reshape(-1)] + q_list
                             + [jnp.zeros((HEADS_PAD - NUM_HEADS) * 2 * HIDDEN, jnp.float32)])
    vqflat = vqflat.reshape(1, HEADS_PAD * 2 * HIDDEN)

    # fused bi-GRU + attention; one packed (NPAD, 4H) output buffer
    out = run_fused(x_cat, vqflat, params)
    d2 = 2 * HIDDEN
    sentences_vector = out[:n, :d2].reshape(b, s, d2)                   # (B, S, 2H)
    h_output = jnp.stack([out[:n, d2:d2 + HIDDEN],                      # fwd final hidden
                          out[:n, d2 + HIDDEN:]], axis=0)               # bwd final hidden
    return sentences_vector, h_output, q_list


# ------------------------------------- main ----------------------------------------
if __name__ == "__main__":
    params = init_params()

    key = jax.random.PRNGKey(0)
    k1, k2 = jax.random.split(key)
    input_ids = jax.random.randint(k1, (B, S, W), 0, VOCAB, dtype=jnp.int32)
    qkeys = jax.random.split(k2, NUM_Q)
    query_ids = {i: jax.random.randint(qkeys[i], (3 + i,), 0, VOCAB, dtype=jnp.int32)
                 for i in range(NUM_Q)}

    sentences_vector, h_output, query_emb = word_att_net_forward(input_ids, query_ids, params)
    jax.block_until_ready((sentences_vector, h_output, query_emb))

    assert sentences_vector.shape == (B, S, 2 * HIDDEN)
    assert h_output.shape == (2, B * S, HIDDEN)
    assert len(query_emb) == NUM_Q and query_emb[0].shape == (EMB,)
    assert bool(jnp.all(jnp.isfinite(sentences_vector)))
    assert bool(jnp.all(jnp.isfinite(h_output)))
    print("KERNEL_OK")
</pallas_src>

<mosaic_0001>
module attributes {stable_mosaic.version = 11 : i64} {
  func.func @fused_word_att_kernel(%arg0: memref<8x8x64xbf16, #tpu.memory_space<vmem>>, %arg1: memref<64x96xbf16, #tpu.memory_space<vmem>>, %arg2: memref<1x96xf32, #tpu.memory_space<vmem>>, %arg3: memref<32x96xbf16, #tpu.memory_space<vmem>>, %arg4: memref<1x32xf32, #tpu.memory_space<vmem>>, %arg5: memref<32x256xbf16, #tpu.memory_space<vmem>>, %arg6: memref<1x256xf32, #tpu.memory_space<vmem>>, %arg7: memref<1x256xf32, #tpu.memory_space<vmem>>, %arg8: memref<256x8xbf16, #tpu.memory_space<vmem>>, %arg9: memref<1x8xf32, #tpu.memory_space<vmem>>, %arg10: memref<8x64xf32, #tpu.memory_space<vmem>>, %arg11: memref<8x8x32xf32, #tpu.memory_space<vmem>>) attributes {dimension_semantics = [], scalar_prefetch = 0 : i64, scratch_operands = 1 : i64, tpu.core_type = #tpu.core_type<tc>} {
    %c0 = arith.constant 0 : index
    %c0_0 = arith.constant 0 : index
    %c0_1 = arith.constant 0 : index
    %0 = vector.load %arg0[%c0, %c0_0, %c0_1] : memref<8x8x64xbf16, #tpu.memory_space<vmem>>, vector<8x8x64xbf16>
    %1 = vector.shape_cast %0 : vector<8x8x64xbf16> to vector<64x64xbf16>
    %c0_2 = arith.constant 0 : index
    %c0_3 = arith.constant 0 : index
    %2 = vector.load %arg1[%c0_2, %c0_3] : memref<64x96xbf16, #tpu.memory_space<vmem>>, vector<64x96xbf16>
    %cst = arith.constant dense<0.000000e+00> : vector<64x96xf32>
    %3 = tpu.matmul %1, %2, %cst {dimension_numbers = #tpu.dot_dimension_numbers<[1], [0], [0], [1], [0, 0, 1, 1], [], []>} : vector<64x64xbf16>, vector<64x96xbf16>, vector<64x96xf32> -> vector<64x96xf32>
    %c0_4 = arith.constant 0 : index
    %c0_5 = arith.constant 0 : index
    %4 = vector.load %arg2[%c0_4, %c0_5] : memref<1x96xf32, #tpu.memory_space<vmem>>, vector<1x96xf32>
    %5 = vector.broadcast %4 : vector<1x96xf32> to vector<64x96xf32>
    %6 = arith.addf %3, %5 : vector<64x96xf32>
    %7 = vector.shape_cast %6 : vector<64x96xf32> to vector<8x8x96xf32>
    %c0_6 = arith.constant 0 : index
    %c0_7 = arith.constant 0 : index
    %8 = vector.load %arg3[%c0_6, %c0_7] : memref<32x96xbf16, #tpu.memory_space<vmem>>, vector<32x96xbf16>
    %c0_8 = arith.constant 0 : index
    %c0_9 = arith.constant 0 : index
    %9 = vector.load %arg4[%c0_8, %c0_9] : memref<1x32xf32, #tpu.memory_space<vmem>>, vector<1x32xf32>
    %10 = vector.shape_cast %9 : vector<1x32xf32> to vector<1x32xf32>
    %11 = vector.broadcast %10 : vector<1x32xf32> to vector<8x32xf32>
    %cst_10 = arith.constant 0.000000e+00 : f32
    %12 = vector.broadcast %cst_10 : f32 to vector<8x32xf32>
    %13 = vector.extract_strided_slice %7 {offsets = [0, 0, 0], sizes = [1, 8, 96], strides = [1, 1, 1]} : vector<8x8x96xf32> to vector<1x8x96xf32>
    %14 = vector.shape_cast %13 : vector<1x8x96xf32> to vector<8x96xf32>
    %15 = arith.truncf %12 : vector<8x32xf32> to vector<8x32xbf16>
    %cst_11 = arith.constant dense<0.000000e+00> : vector<8x96xf32>
    %16 = tpu.matmul %15, %8, %cst_11 {dimension_numbers = #tpu.dot_dimension_numbers<[1], [0], [0], [1], [0, 0, 1, 1], [], []>} : vector<8x32xbf16>, vector<32x96xbf16>, vector<8x96xf32> -> vector<8x96xf32>
    %17 = vector.extract_strided_slice %14 {offsets = [0, 0], sizes = [8, 64], strides = [1, 1]} : vector<8x96xf32> to vector<8x64xf32>
    %18 = vector.extract_strided_slice %16 {offsets = [0, 0], sizes = [8, 64], strides = [1, 1]} : vector<8x96xf32> to vector<8x64xf32>
    %19 = arith.addf %17, %18 : vector<8x64xf32>
    %20 = arith.negf %19 : vector<8x64xf32>
    %21 = math.exp %20 : vector<8x64xf32>
    %cst_12 = arith.constant 1.000000e+00 : f32
    %22 = vector.broadcast %cst_12 : f32 to vector<8x64xf32>
    %23 = arith.addf %22, %21 : vector<8x64xf32>
    %24 = arith.divf %22, %23 : vector<8x64xf32>
    %25 = vector.extract_strided_slice %24 {offsets = [0, 0], sizes = [8, 32], strides = [1, 1]} : vector<8x64xf32> to vector<8x32xf32>
    %26 = vector.extract_strided_slice %24 {offsets = [0, 32], sizes = [8, 32], strides = [1, 1]} : vector<8x64xf32> to vector<8x32xf32>
    %27 = vector.extract_strided_slice %14 {offsets = [0, 64], sizes = [8, 32], strides = [1, 1]} : vector<8x96xf32> to vector<8x32xf32>
    %28 = vector.extract_strided_slice %16 {offsets = [0, 64], sizes = [8, 32], strides = [1, 1]} : vector<8x96xf32> to vector<8x32xf32>
    %29 = arith.addf %28, %11 : vector<8x32xf32>
    %30 = arith.mulf %25, %29 : vector<8x32xf32>
    %31 = arith.addf %27, %30 : vector<8x32xf32>
    %32 = math.tanh %31 : vector<8x32xf32>
    %cst_13 = arith.constant 1.000000e+00 : f32
    %33 = vector.broadcast %cst_13 : f32 to vector<8x32xf32>
    %34 = arith.subf %33, %26 : vector<8x32xf32>
    %35 = arith.mulf %34, %32 : vector<8x32xf32>
    %36 = arith.mulf %26, %12 : vector<8x32xf32>
    %37 = arith.addf %35, %36 : vector<8x32xf32>
    %38 = vector.extract_strided_slice %37 {offsets = [0, 0], sizes = [8, 16], strides = [1, 1]} : vector<8x32xf32> to vector<8x16xf32>
    %c0_14 = arith.constant 0 : index
    %c0_15 = arith.constant 0 : index
    %c0_16 = arith.constant 0 : index
    %39 = vector.load %arg11[%c0_14, %c0_15, %c0_16] : memref<8x8x32xf32, #tpu.memory_space<vmem>>, vector<1x8x16xf32>
    %40 = vector.shape_cast %39 : vector<1x8x16xf32> to vector<8x16xf32>
    %41 = vector.shape_cast %38 : vector<8x16xf32> to vector<1x8x16xf32>
    tpu.vector_store %arg11[%c0_14, %c0_15, %c0_16], %41 {strides = array<i32>} : memref<8x8x32xf32, #tpu.memory_space<vmem>>, vector<1x8x16xf32>,
    %42 = vector.extract_strided_slice %37 {offsets = [0, 16], sizes = [8, 16], strides = [1, 1]} : vector<8x32xf32> to vector<8x16xf32>
    %c7 = arith.constant 7 : index
    %c0_17 = arith.constant 0 : index
    %c16 = arith.constant 16 : index
    %43 = vector.load %arg11[%c7, %c0_17, %c16] : memref<8x8x32xf32, #tpu.memory_space<vmem>>, vector<1x8x16xf32>
    %44 = vector.shape_cast %43 : vector<1x8x16xf32> to vector<8x16xf32>
    %45 = vector.shape_cast %42 : vector<8x16xf32> to vector<1x8x16xf32>
    tpu.vector_store %arg11[%c7, %c0_17, %c16], %45 {strides = array<i32>} : memref<8x8x32xf32, #tpu.memory_space<vmem>>, vector<1x8x16xf32>,
    %46 = vector.extract_strided_slice %7 {offsets = [1, 0, 0], sizes = [1, 8, 96], strides = [1, 1, 1]} : vector<8x8x96xf32> to vector<1x8x96xf32>
    %47 = vector.shape_cast %46 : vector<1x8x96xf32> to vector<8x96xf32>
    %48 = arith.truncf %37 : vector<8x32xf32> to vector<8x32xbf16>
    %cst_18 = arith.constant dense<0.000000e+00> : vector<8x96xf32>
    %49 = tpu.matmul %48, %8, %cst_18 {dimension_numbers = #tpu.dot_dimension_numbers<[1], [0], [0], [1], [0, 0, 1, 1], [], []>} : vector<8x32xbf16>, vector<32x96xbf16>, vector<8x96xf32> -> vector<8x96xf32>
    %50 = vector.extract_strided_slice %47 {offsets = [0, 0], sizes = [8, 64], strides = [1, 1]} : vector<8x96xf32> to vector<8x64xf32>
    %51 = vector.extract_strided_slice %49 {offsets = [0, 0], sizes = [8, 64], strides = [1, 1]} : vector<8x96xf32> to vector<8x64xf32>
    %52 = arith.addf %50, %51 : vector<8x64xf32>
    %53 = arith.negf %52 : vector<8x64xf32>
    %54 = math.exp %53 : vector<8x64xf32>
    %cst_19 = arith.constant 1.000000e+00 : f32
    %55 = vector.broadcast %cst_19 : f32 to vector<8x64xf32>
    %56 = arith.addf %55, %54 : vector<8x64xf32>
    %57 = arith.divf %55, %56 : vector<8x64xf32>
    %58 = vector.extract_strided_slice %57 {offsets = [0, 0], sizes = [8, 32], strides = [1, 1]} : vector<8x64xf32> to vector<8x32xf32>
    %59 = vector.extract_strided_slice %57 {offsets = [0, 32], sizes = [8, 32], strides = [1, 1]} : vector<8x64xf32> to vector<8x32xf32>
    %60 = vector.extract_strided_slice %47 {offsets = [0, 64], sizes = [8, 32], strides = [1, 1]} : vector<8x96xf32> to vector<8x32xf32>
    %61 = vector.extract_strided_slice %49 {offsets = [0, 64], sizes = [8, 32], strides = [1, 1]} : vector<8x96xf32> to vector<8x32xf32>
    %62 = arith.addf %61, %11 : vector<8x32xf32>
    %63 = arith.mulf %58, %62 : vector<8x32xf32>
    %64 = arith.addf %60, %63 : vector<8x32xf32>
    %65 = math.tanh %64 : vector<8x32xf32>
    %cst_20 = arith.constant 1.000000e+00 : f32
    %66 = vector.broadcast %cst_20 : f32 to vector<8x32xf32>
    %67 = arith.subf %66, %59 : vector<8x32xf32>
    %68 = arith.mulf %67, %65 : vector<8x32xf32>
    %69 = arith.mulf %59, %37 : vector<8x32xf32>
    %70 = arith.addf %68, %69 : vector<8x32xf32>
    %71 = vector.extract_strided_slice %70 {offsets = [0, 0], sizes = [8, 16], strides = [1, 1]} : vector<8x32xf32> to vector<8x16xf32>
    %c1 = arith.constant 1 : index
    %c0_21 = arith.constant 0 : index
    %c0_22 = arith.constant 0 : index
    %72 = vector.load %arg11[%c1, %c0_21, %c0_22] : memref<8x8x32xf32, #tpu.memory_space<vmem>>, vector<1x8x16xf32>
    %73 = vector.shape_cast %72 : vector<1x8x16xf32> to vector<8x16xf32>
    %74 = vector.shape_cast %71 : vector<8x16xf32> to vector<1x8x16xf32>
    tpu.vector_store %arg11[%c1, %c0_21, %c0_22], %74 {strides = array<i32>} : memref<8x8x32xf32, #tpu.memory_space<vmem>>, vector<1x8x16xf32>,
    %75 = vector.extract_strided_slice %70 {offsets = [0, 16], sizes = [8, 16], strides = [1, 1]} : vector<8x32xf32> to vector<8x16xf32>
    %c6 = arith.constant 6 : index
    %c0_23 = arith.constant 0 : index
    %c16_24 = arith.constant 16 : index
    %76 = vector.load %arg11[%c6, %c0_23, %c16_24] : memref<8x8x32xf32, #tpu.memory_space<vmem>>, vector<1x8x16xf32>
    %77 = vector.shape_cast %76 : vector<1x8x16xf32> to vector<8x16xf32>
    %78 = vector.shape_cast %75 : vector<8x16xf32> to vector<1x8x16xf32>
    tpu.vector_store %arg11[%c6, %c0_23, %c16_24], %78 {strides = array<i32>} : memref<8x8x32xf32, #tpu.memory_space<vmem>>, vector<1x8x16xf32>,
    %79 = vector.extract_strided_slice %7 {offsets = [2, 0, 0], sizes = [1, 8, 96], strides = [1, 1, 1]} : vector<8x8x96xf32> to vector<1x8x96xf32>
    %80 = vector.shape_cast %79 : vector<1x8x96xf32> to vector<8x96xf32>
    %81 = arith.truncf %70 : vector<8x32xf32> to vector<8x32xbf16>
    %cst_25 = arith.constant dense<0.000000e+00> : vector<8x96xf32>
    %82 = tpu.matmul %81, %8, %cst_25 {dimension_numbers = #tpu.dot_dimension_numbers<[1], [0], [0], [1], [0, 0, 1, 1], [], []>} : vector<8x32xbf16>, vector<32x96xbf16>, vector<8x96xf32> -> vector<8x96xf32>
    %83 = vector.extract_strided_slice %80 {offsets = [0, 0], sizes = [8, 64], strides = [1, 1]} : vector<8x96xf32> to vector<8x64xf32>
    %84 = vector.extract_strided_slice %82 {offsets = [0, 0], sizes = [8, 64], strides = [1, 1]} : vector<8x96xf32> to vector<8x64xf32>
    %85 = arith.addf %83, %84 : vector<8x64xf32>
    %86 = arith.negf %85 : vector<8x64xf32>
    %87 = math.exp %86 : vector<8x64xf32>
    %cst_26 = arith.constant 1.000000e+00 : f32
    %88 = vector.broadcast %cst_26 : f32 to vector<8x64xf32>
    %89 = arith.addf %88, %87 : vector<8x64xf32>
    %90 = arith.divf %88, %89 : vector<8x64xf32>
    %91 = vector.extract_strided_slice %90 {offsets = [0, 0], sizes = [8, 32], strides = [1, 1]} : vector<8x64xf32> to vector<8x32xf32>
    %92 = vector.extract_strided_slice %90 {offsets = [0, 32], sizes = [8, 32], strides = [1, 1]} : vector<8x64xf32> to vector<8x32xf32>
    %93 = vector.extract_strided_slice %80 {offsets = [0, 64], sizes = [8, 32], strides = [1, 1]} : vector<8x96xf32> to vector<8x32xf32>
    %94 = vector.extract_strided_slice %82 {offsets = [0, 64], sizes = [8, 32], strides = [1, 1]} : vector<8x96xf32> to vector<8x32xf32>
    %95 = arith.addf %94, %11 : vector<8x32xf32>
    %96 = arith.mulf %91, %95 : vector<8x32xf32>
    %97 = arith.addf %93, %96 : vector<8x32xf32>
    %98 = math.tanh %97 : vector<8x32xf32>
    %cst_27 = arith.constant 1.000000e+00 : f32
    %99 = vector.broadcast %cst_27 : f32 to vector<8x32xf32>
    %100 = arith.subf %99, %92 : vector<8x32xf32>
    %101 = arith.mulf %100, %98 : vector<8x32xf32>
    %102 = arith.mulf %92, %70 : vector<8x32xf32>
    %103 = arith.addf %101, %102 : vector<8x32xf32>
    %104 = vector.extract_strided_slice %103 {offsets = [0, 0], sizes = [8, 16], strides = [1, 1]} : vector<8x32xf32> to vector<8x16xf32>
    %c2 = arith.constant 2 : index
    %c0_28 = arith.constant 0 : index
    %c0_29 = arith.constant 0 : index
    %105 = vector.load %arg11[%c2, %c0_28, %c0_29] : memref<8x8x32xf32, #tpu.memory_space<vmem>>, vector<1x8x16xf32>
    %106 = vector.shape_cast %105 : vector<1x8x16xf32> to vector<8x16xf32>
    %107 = vector.shape_cast %104 : vector<8x16xf32> to vector<1x8x16xf32>
    tpu.vector_store %arg11[%c2, %c0_28, %c0_29], %107 {strides = array<i32>} : memref<8x8x32xf32, #tpu.memory_space<vmem>>, vector<1x8x16xf32>,
    %108 = vector.extract_strided_slice %103 {offsets = [0, 16], sizes = [8, 16], strides = [1, 1]} : vector<8x32xf32> to vector<8x16xf32>
    %c5 = arith.constant 5 : index
    %c0_30 = arith.constant 0 : index
    %c16_31 = arith.constant 16 : index
    %109 = vector.load %arg11[%c5, %c0_30, %c16_31] : memref<8x8x32xf32, #tpu.memory_space<vmem>>, vector<1x8x16xf32>
    %110 = vector.shape_cast %109 : vector<1x8x16xf32> to vector<8x16xf32>
    %111 = vector.shape_cast %108 : vector<8x16xf32> to vector<1x8x16xf32>
    tpu.vector_store %arg11[%c5, %c0_30, %c16_31], %111 {strides = array<i32>} : memref<8x8x32xf32, #tpu.memory_space<vmem>>, vector<1x8x16xf32>,
    %112 = vector.extract_strided_slice %7 {offsets = [3, 0, 0], sizes = [1, 8, 96], strides = [1, 1, 1]} : vector<8x8x96xf32> to vector<1x8x96xf32>
    %113 = vector.shape_cast %112 : vector<1x8x96xf32> to vector<8x96xf32>
    %114 = arith.truncf %103 : vector<8x32xf32> to vector<8x32xbf16>
    %cst_32 = arith.constant dense<0.000000e+00> : vector<8x96xf32>
    %115 = tpu.matmul %114, %8, %cst_32 {dimension_numbers = #tpu.dot_dimension_numbers<[1], [0], [0], [1], [0, 0, 1, 1], [], []>} : vector<8x32xbf16>, vector<32x96xbf16>, vector<8x96xf32> -> vector<8x96xf32>
    %116 = vector.extract_strided_slice %113 {offsets = [0, 0], sizes = [8, 64], strides = [1, 1]} : vector<8x96xf32> to vector<8x64xf32>
    %117 = vector.extract_strided_slice %115 {offsets = [0, 0], sizes = [8, 64], strides = [1, 1]} : vector<8x96xf32> to vector<8x64xf32>
    %118 = arith.addf %116, %117 : vector<8x64xf32>
    %119 = arith.negf %118 : vector<8x64xf32>
    %120 = math.exp %119 : vector<8x64xf32>
    %cst_33 = arith.constant 1.000000e+00 : f32
    %121 = vector.broadcast %cst_33 : f32 to vector<8x64xf32>
    %122 = arith.addf %121, %120 : vector<8x64xf32>
    %123 = arith.divf %121, %122 : vector<8x64xf32>
    %124 = vector.extract_strided_slice %123 {offsets = [0, 0], sizes = [8, 32], strides = [1, 1]} : vector<8x64xf32> to vector<8x32xf32>
    %125 = vector.extract_strided_slice %123 {offsets = [0, 32], sizes = [8, 32], strides = [1, 1]} : vector<8x64xf32> to vector<8x32xf32>
    %126 = vector.extract_strided_slice %113 {offsets = [0, 64], sizes = [8, 32], strides = [1, 1]} : vector<8x96xf32> to vector<8x32xf32>
    %127 = vector.extract_strided_slice %115 {offsets = [0, 64], sizes = [8, 32], strides = [1, 1]} : vector<8x96xf32> to vector<8x32xf32>
    %128 = arith.addf %127, %11 : vector<8x32xf32>
    %129 = arith.mulf %124, %128 : vector<8x32xf32>
    %130 = arith.addf %126, %129 : vector<8x32xf32>
    %131 = math.tanh %130 : vector<8x32xf32>
    %cst_34 = arith.constant 1.000000e+00 : f32
    %132 = vector.broadcast %cst_34 : f32 to vector<8x32xf32>
    %133 = arith.subf %132, %125 : vector<8x32xf32>
    %134 = arith.mulf %133, %131 : vector<8x32xf32>
    %135 = arith.mulf %125, %103 : vector<8x32xf32>
    %136 = arith.addf %134, %135 : vector<8x32xf32>
    %137 = vector.extract_strided_slice %136 {offsets = [0, 0], sizes = [8, 16], strides = [1, 1]} : vector<8x32xf32> to vector<8x16xf32>
    %c3 = arith.constant 3 : index
    %c0_35 = arith.constant 0 : index
    %c0_36 = arith.constant 0 : index
    %138 = vector.load %arg11[%c3, %c0_35, %c0_36] : memref<8x8x32xf32, #tpu.memory_space<vmem>>, vector<1x8x16xf32>
    %139 = vector.shape_cast %138 : vector<1x8x16xf32> to vector<8x16xf32>
    %140 = vector.shape_cast %137 : vector<8x16xf32> to vector<1x8x16xf32>
    tpu.vector_store %arg11[%c3, %c0_35, %c0_36], %140 {strides = array<i32>} : memref<8x8x32xf32, #tpu.memory_space<vmem>>, vector<1x8x16xf32>,
    %141 = vector.extract_strided_slice %136 {offsets = [0, 16], sizes = [8, 16], strides = [1, 1]} : vector<8x32xf32> to vector<8x16xf32>
    %c4 = arith.constant 4 : index
    %c0_37 = arith.constant 0 : index
    %c16_38 = arith.constant 16 : index
    %142 = vector.load %arg11[%c4, %c0_37, %c16_38] : memref<8x8x32xf32, #tpu.memory_space<vmem>>, vector<1x8x16xf32>
    %143 = vector.shape_cast %142 : vector<1x8x16xf32> to vector<8x16xf32>
    %144 = vector.shape_cast %141 : vector<8x16xf32> to vector<1x8x16xf32>
    tpu.vector_store %arg11[%c4, %c0_37, %c16_38], %144 {strides = array<i32>} : memref<8x8x32xf32, #tpu.memory_space<vmem>>, vector<1x8x16xf32>,
    %145 = vector.extract_strided_slice %7 {offsets = [4, 0, 0], sizes = [1, 8, 96], strides = [1, 1, 1]} : vector<8x8x96xf32> to vector<1x8x96xf32>
    %146 = vector.shape_cast %145 : vector<1x8x96xf32> to vector<8x96xf32>
    %147 = arith.truncf %136 : vector<8x32xf32> to vector<8x32xbf16>
    %cst_39 = arith.constant dense<0.000000e+00> : vector<8x96xf32>
    %148 = tpu.matmul %147, %8, %cst_39 {dimension_numbers = #tpu.dot_dimension_numbers<[1], [0], [0], [1], [0, 0, 1, 1], [], []>} : vector<8x32xbf16>, vector<32x96xbf16>, vector<8x96xf32> -> vector<8x96xf32>
    %149 = vector.extract_strided_slice %146 {offsets = [0, 0], sizes = [8, 64], strides = [1, 1]} : vector<8x96xf32> to vector<8x64xf32>
    %150 = vector.extract_strided_slice %148 {offsets = [0, 0], sizes = [8, 64], strides = [1, 1]} : vector<8x96xf32> to vector<8x64xf32>
    %151 = arith.addf %149, %150 : vector<8x64xf32>
    %152 = arith.negf %151 : vector<8x64xf32>
    %153 = math.exp %152 : vector<8x64xf32>
    %cst_40 = arith.constant 1.000000e+00 : f32
    %154 = vector.broadcast %cst_40 : f32 to vector<8x64xf32>
    %155 = arith.addf %154, %153 : vector<8x64xf32>
    %156 = arith.divf %154, %155 : vector<8x64xf32>
    %157 = vector.extract_strided_slice %156 {offsets = [0, 0], sizes = [8, 32], strides = [1, 1]} : vector<8x64xf32> to vector<8x32xf32>
    %158 = vector.extract_strided_slice %156 {offsets = [0, 32], sizes = [8, 32], strides = [1, 1]} : vector<8x64xf32> to vector<8x32xf32>
    %159 = vector.extract_strided_slice %146 {offsets = [0, 64], sizes = [8, 32], strides = [1, 1]} : vector<8x96xf32> to vector<8x32xf32>
    %160 = vector.extract_strided_slice %148 {offsets = [0, 64], sizes = [8, 32], strides = [1, 1]} : vector<8x96xf32> to vector<8x32xf32>
    %161 = arith.addf %160, %11 : vector<8x32xf32>
    %162 = arith.mulf %157, %161 : vector<8x32xf32>
    %163 = arith.addf %159, %162 : vector<8x32xf32>
    %164 = math.tanh %163 : vector<8x32xf32>
    %cst_41 = arith.constant 1.000000e+00 : f32
    %165 = vector.broadcast %cst_41 : f32 to vector<8x32xf32>
    %166 = arith.subf %165, %158 : vector<8x32xf32>
    %167 = arith.mulf %166, %164 : vector<8x32xf32>
    %168 = arith.mulf %158, %136 : vector<8x32xf32>
    %169 = arith.addf %167, %168 : vector<8x32xf32>
    %170 = vector.extract_strided_slice %169 {offsets = [0, 0], sizes = [8, 16], strides = [1, 1]} : vector<8x32xf32> to vector<8x16xf32>
    %c4_42 = arith.constant 4 : index
    %c0_43 = arith.constant 0 : index
    %c0_44 = arith.constant 0 : index
    %171 = vector.load %arg11[%c4_42, %c0_43, %c0_44] : memref<8x8x32xf32, #tpu.memory_space<vmem>>, vector<1x8x16xf32>
    %172 = vector.shape_cast %171 : vector<1x8x16xf32> to vector<8x16xf32>
    %173 = vector.shape_cast %170 : vector<8x16xf32> to vector<1x8x16xf32>
    tpu.vector_store %arg11[%c4_42, %c0_43, %c0_44], %173 {strides = array<i32>} : memref<8x8x32xf32, #tpu.memory_space<vmem>>, vector<1x8x16xf32>,
    %174 = vector.extract_strided_slice %169 {offsets = [0, 16], sizes = [8, 16], strides = [1, 1]} : vector<8x32xf32> to vector<8x16xf32>
    %c3_45 = arith.constant 3 : index
    %c0_46 = arith.constant 0 : index
    %c16_47 = arith.constant 16 : index
    %175 = vector.load %arg11[%c3_45, %c0_46, %c16_47] : memref<8x8x32xf32, #tpu.memory_space<vmem>>, vector<1x8x16xf32>
    %176 = vector.shape_cast %175 : vector<1x8x16xf32> to vector<8x16xf32>
    %177 = vector.shape_cast %174 : vector<8x16xf32> to vector<1x8x16xf32>
    tpu.vector_store %arg11[%c3_45, %c0_46, %c16_47], %177 {strides = array<i32>} : memref<8x8x32xf32, #tpu.memory_space<vmem>>, vector<1x8x16xf32>,
    %178 = vector.extract_strided_slice %7 {offsets = [5, 0, 0], sizes = [1, 8, 96], strides = [1, 1, 1]} : vector<8x8x96xf32> to vector<1x8x96xf32>
    %179 = vector.shape_cast %178 : vector<1x8x96xf32> to vector<8x96xf32>
    %180 = arith.truncf %169 : vector<8x32xf32> to vector<8x32xbf16>
    %cst_48 = arith.constant dense<0.000000e+00> : vector<8x96xf32>
    %181 = tpu.matmul %180, %8, %cst_48 {dimension_numbers = #tpu.dot_dimension_numbers<[1], [0], [0], [1], [0, 0, 1, 1], [], []>} : vector<8x32xbf16>, vector<32x96xbf16>, vector<8x96xf32> -> vector<8x96xf32>
    %182 = vector.extract_strided_slice %179 {offsets = [0, 0], sizes = [8, 64], strides = [1, 1]} : vector<8x96xf32> to vector<8x64xf32>
    %183 = vector.extract_strided_slice %181 {offsets = [0, 0], sizes = [8, 64], strides = [1, 1]} : vector<8x96xf32> to vector<8x64xf32>
    %184 = arith.addf %182, %183 : vector<8x64xf32>
    %185 = arith.negf %184 : vector<8x64xf32>
    %186 = math.exp %185 : vector<8x64xf32>
    %cst_49 = arith.constant 1.000000e+00 : f32
    %187 = vector.broadcast %cst_49 : f32 to vector<8x64xf32>
    %188 = arith.addf %187, %186 : vector<8x64xf32>
    %189 = arith.divf %187, %188 : vector<8x64xf32>
    %190 = vector.extract_strided_slice %189 {offsets = [0, 0], sizes = [8, 32], strides = [1, 1]} : vector<8x64xf32> to vector<8x32xf32>
    %191 = vector.extract_strided_slice %189 {offsets = [0, 32], sizes = [8, 32], strides = [1, 1]} : vector<8x64xf32> to vector<8x32xf32>
    %192 = vector.extract_strided_slice %179 {offsets = [0, 64], sizes = [8, 32], strides = [1, 1]} : vector<8x96xf32> to vector<8x32xf32>
    %193 = vector.extract_strided_slice %181 {offsets = [0, 64], sizes = [8, 32], strides = [1, 1]} : vector<8x96xf32> to vector<8x32xf32>
    %194 = arith.addf %193, %11 : vector<8x32xf32>
    %195 = arith.mulf %190, %194 : vector<8x32xf32>
    %196 = arith.addf %192, %195 : vector<8x32xf32>
    %197 = math.tanh %196 : vector<8x32xf32>
    %cst_50 = arith.constant 1.000000e+00 : f32
    %198 = vector.broadcast %cst_50 : f32 to vector<8x32xf32>
    %199 = arith.subf %198, %191 : vector<8x32xf32>
    %200 = arith.mulf %199, %197 : vector<8x32xf32>
    %201 = arith.mulf %191, %169 : vector<8x32xf32>
    %202 = arith.addf %200, %201 : vector<8x32xf32>
    %203 = vector.extract_strided_slice %202 {offsets = [0, 0], sizes = [8, 16], strides = [1, 1]} : vector<8x32xf32> to vector<8x16xf32>
    %c5_51 = arith.constant 5 : index
    %c0_52 = arith.constant 0 : index
    %c0_53 = arith.constant 0 : index
    %204 = vector.load %arg11[%c5_51, %c0_52, %c0_53] : memref<8x8x32xf32, #tpu.memory_space<vmem>>, vector<1x8x16xf32>
    %205 = vector.shape_cast %204 : vector<1x8x16xf32> to vector<8x16xf32>
    %206 = vector.shape_cast %203 : vector<8x16xf32> to vector<1x8x16xf32>
    tpu.vector_store %arg11[%c5_51, %c0_52, %c0_53], %206 {strides = array<i32>} : memref<8x8x32xf32, #tpu.memory_space<vmem>>, vector<1x8x16xf32>,
    %207 = vector.extract_strided_slice %202 {offsets = [0, 16], sizes = [8, 16], strides = [1, 1]} : vector<8x32xf32> to vector<8x16xf32>
    %c2_54 = arith.constant 2 : index
    %c0_55 = arith.constant 0 : index
    %c16_56 = arith.constant 16 : index
    %208 = vector.load %arg11[%c2_54, %c0_55, %c16_56] : memref<8x8x32xf32, #tpu.memory_space<vmem>>, vector<1x8x16xf32>
    %209 = vector.shape_cast %208 : vector<1x8x16xf32> to vector<8x16xf32>
    %210 = vector.shape_cast %207 : vector<8x16xf32> to vector<1x8x16xf32>
    tpu.vector_store %arg11[%c2_54, %c0_55, %c16_56], %210 {strides = array<i32>} : memref<8x8x32xf32, #tpu.memory_space<vmem>>, vector<1x8x16xf32>,
    %211 = vector.extract_strided_slice %7 {offsets = [6, 0, 0], sizes = [1, 8, 96], strides = [1, 1, 1]} : vector<8x8x96xf32> to vector<1x8x96xf32>
    %212 = vector.shape_cast %211 : vector<1x8x96xf32> to vector<8x96xf32>
    %213 = arith.truncf %202 : vector<8x32xf32> to vector<8x32xbf16>
    %cst_57 = arith.constant dense<0.000000e+00> : vector<8x96xf32>
    %214 = tpu.matmul %213, %8, %cst_57 {dimension_numbers = #tpu.dot_dimension_numbers<[1], [0], [0], [1], [0, 0, 1, 1], [], []>} : vector<8x32xbf16>, vector<32x96xbf16>, vector<8x96xf32> -> vector<8x96xf32>
    %215 = vector.extract_strided_slice %212 {offsets = [0, 0], sizes = [8, 64], strides = [1, 1]} : vector<8x96xf32> to vector<8x64xf32>
    %216 = vector.extract_strided_slice %214 {offsets = [0, 0], sizes = [8, 64], strides = [1, 1]} : vector<8x96xf32> to vector<8x64xf32>
    %217 = arith.addf %215, %216 : vector<8x64xf32>
    %218 = arith.negf %217 : vector<8x64xf32>
    %219 = math.exp %218 : vector<8x64xf32>
    %cst_58 = arith.constant 1.000000e+00 : f32
    %220 = vector.broadcast %cst_58 : f32 to vector<8x64xf32>
    %221 = arith.addf %220, %219 : vector<8x64xf32>
    %222 = arith.divf %220, %221 : vector<8x64xf32>
    %223 = vector.extract_strided_slice %222 {offsets = [0, 0], sizes = [8, 32], strides = [1, 1]} : vector<8x64xf32> to vector<8x32xf32>
    %224 = vector.extract_strided_slice %222 {offsets = [0, 32], sizes = [8, 32], strides = [1, 1]} : vector<8x64xf32> to vector<8x32xf32>
    %225 = vector.extract_strided_slice %212 {offsets = [0, 64], sizes = [8, 32], strides = [1, 1]} : vector<8x96xf32> to vector<8x32xf32>
    %226 = vector.extract_strided_slice %214 {offsets = [0, 64], sizes = [8, 32], strides = [1, 1]} : vector<8x96xf32> to vector<8x32xf32>
    %227 = arith.addf %226, %11 : vector<8x32xf32>
    %228 = arith.mulf %223, %227 : vector<8x32xf32>
    %229 = arith.addf %225, %228 : vector<8x32xf32>
    %230 = math.tanh %229 : vector<8x32xf32>
    %cst_59 = arith.constant 1.000000e+00 : f32
    %231 = vector.broadcast %cst_59 : f32 to vector<8x32xf32>
    %232 = arith.subf %231, %224 : vector<8x32xf32>
    %233 = arith.mulf %232, %230 : vector<8x32xf32>
    %234 = arith.mulf %224, %202 : vector<8x32xf32>
    %235 = arith.addf %233, %234 : vector<8x32xf32>
    %236 = vector.extract_strided_slice %235 {offsets = [0, 0], sizes = [8, 16], strides = [1, 1]} : vector<8x32xf32> to vector<8x16xf32>
    %c6_60 = arith.constant 6 : index
    %c0_61 = arith.constant 0 : index
    %c0_62 = arith.constant 0 : index
    %237 = vector.load %arg11[%c6_60, %c0_61, %c0_62] : memref<8x8x32xf32, #tpu.memory_space<vmem>>, vector<1x8x16xf32>
    %238 = vector.shape_cast %237 : vector<1x8x16xf32> to vector<8x16xf32>
    %239 = vector.shape_cast %236 : vector<8x16xf32> to vector<1x8x16xf32>
    tpu.vector_store %arg11[%c6_60, %c0_61, %c0_62], %239 {strides = array<i32>} : memref<8x8x32xf32, #tpu.memory_space<vmem>>, vector<1x8x16xf32>,
    %240 = vector.extract_strided_slice %235 {offsets = [0, 16], sizes = [8, 16], strides = [1, 1]} : vector<8x32xf32> to vector<8x16xf32>
    %c1_63 = arith.constant 1 : index
    %c0_64 = arith.constant 0 : index
    %c16_65 = arith.constant 16 : index
    %241 = vector.load %arg11[%c1_63, %c0_64, %c16_65] : memref<8x8x32xf32, #tpu.memory_space<vmem>>, vector<1x8x16xf32>
    %242 = vector.shape_cast %241 : vector<1x8x16xf32> to vector<8x16xf32>
    %243 = vector.shape_cast %240 : vector<8x16xf32> to vector<1x8x16xf32>
    tpu.vector_store %arg11[%c1_63, %c0_64, %c16_65], %243 {strides = array<i32>} : memref<8x8x32xf32, #tpu.memory_space<vmem>>, vector<1x8x16xf32>,
    %244 = vector.extract_strided_slice %7 {offsets = [7, 0, 0], sizes = [1, 8, 96], strides = [1, 1, 1]} : vector<8x8x96xf32> to vector<1x8x96xf32>
    %245 = vector.shape_cast %244 : vector<1x8x96xf32> to vector<8x96xf32>
    %246 = arith.truncf %235 : vector<8x32xf32> to vector<8x32xbf16>
    %cst_66 = arith.constant dense<0.000000e+00> : vector<8x96xf32>
    %247 = tpu.matmul %246, %8, %cst_66 {dimension_numbers = #tpu.dot_dimension_numbers<[1], [0], [0], [1], [0, 0, 1, 1], [], []>} : vector<8x32xbf16>, vector<32x96xbf16>, vector<8x96xf32> -> vector<8x96xf32>
    %248 = vector.extract_strided_slice %245 {offsets = [0, 0], sizes = [8, 64], strides = [1, 1]} : vector<8x96xf32> to vector<8x64xf32>
    %249 = vector.extract_strided_slice %247 {offsets = [0, 0], sizes = [8, 64], strides = [1, 1]} : vector<8x96xf32> to vector<8x64xf32>
    %250 = arith.addf %248, %249 : vector<8x64xf32>
    %251 = arith.negf %250 : vector<8x64xf32>
    %252 = math.exp %251 : vector<8x64xf32>
    %cst_67 = arith.constant 1.000000e+00 : f32
    %253 = vector.broadcast %cst_67 : f32 to vector<8x64xf32>
    %254 = arith.addf %253, %252 : vector<8x64xf32>
    %255 = arith.divf %253, %254 : vector<8x64xf32>
    %256 = vector.extract_strided_slice %255 {offsets = [0, 0], sizes = [8, 32], strides = [1, 1]} : vector<8x64xf32> to vector<8x32xf32>
    %257 = vector.extract_strided_slice %255 {offsets = [0, 32], sizes = [8, 32], strides = [1, 1]} : vector<8x64xf32> to vector<8x32xf32>
    %258 = vector.extract_strided_slice %245 {offsets = [0, 64], sizes = [8, 32], strides = [1, 1]} : vector<8x96xf32> to vector<8x32xf32>
    %259 = vector.extract_strided_slice %247 {offsets = [0, 64], sizes = [8, 32], strides = [1, 1]} : vector<8x96xf32> to vector<8x32xf32>
    %260 = arith.addf %259, %11 : vector<8x32xf32>
    %261 = arith.mulf %256, %260 : vector<8x32xf32>
    %262 = arith.addf %258, %261 : vector<8x32xf32>
    %263 = math.tanh %262 : vector<8x32xf32>
    %cst_68 = arith.constant 1.000000e+00 : f32
    %264 = vector.broadcast %cst_68 : f32 to vector<8x32xf32>
    %265 = arith.subf %264, %257 : vector<8x32xf32>
    %266 = arith.mulf %265, %263 : vector<8x32xf32>
    %267 = arith.mulf %257, %235 : vector<8x32xf32>
    %268 = arith.addf %266, %267 : vector<8x32xf32>
    %269 = vector.extract_strided_slice %268 {offsets = [0, 0], sizes = [8, 16], strides = [1, 1]} : vector<8x32xf32> to vector<8x16xf32>
    %c7_69 = arith.constant 7 : index
    %c0_70 = arith.constant 0 : index
    %c0_71 = arith.constant 0 : index
    %270 = vector.load %arg11[%c7_69, %c0_70, %c0_71] : memref<8x8x32xf32, #tpu.memory_space<vmem>>, vector<1x8x16xf32>
    %271 = vector.shape_cast %270 : vector<1x8x16xf32> to vector<8x16xf32>
    %272 = vector.shape_cast %269 : vector<8x16xf32> to vector<1x8x16xf32>
    tpu.vector_store %arg11[%c7_69, %c0_70, %c0_71], %272 {strides = array<i32>} : memref<8x8x32xf32, #tpu.memory_space<vmem>>, vector<1x8x16xf32>,
    %273 = vector.extract_strided_slice %268 {offsets = [0, 16], sizes = [8, 16], strides = [1, 1]} : vector<8x32xf32> to vector<8x16xf32>
    %c0_72 = arith.constant 0 : index
    %c0_73 = arith.constant 0 : index
    %c16_74 = arith.constant 16 : index
    %274 = vector.load %arg11[%c0_72, %c0_73, %c16_74] : memref<8x8x32xf32, #tpu.memory_space<vmem>>, vector<1x8x16xf32>
    %275 = vector.shape_cast %274 : vector<1x8x16xf32> to vector<8x16xf32>
    %276 = vector.shape_cast %273 : vector<8x16xf32> to vector<1x8x16xf32>
    tpu.vector_store %arg11[%c0_72, %c0_73, %c16_74], %276 {strides = array<i32>} : memref<8x8x32xf32, #tpu.memory_space<vmem>>, vector<1x8x16xf32>,
    %c0_75 = arith.constant 0 : index
    %c32 = arith.constant 32 : index
    %277 = vector.load %arg10[%c0_75, %c32] : memref<8x64xf32, #tpu.memory_space<vmem>>, vector<8x32xf32>
    tpu.vector_store %arg10[%c0_75, %c32], %268 {strides = array<i32>} : memref<8x64xf32, #tpu.memory_space<vmem>>, vector<8x32xf32>,
    %c0_76 = arith.constant 0 : index
    %c0_77 = arith.constant 0 : index
    %c0_78 = arith.constant 0 : index
    %278 = vector.load %arg11[%c0_76, %c0_77, %c0_78] : memref<8x8x32xf32, #tpu.memory_space<vmem>>, vector<8x8x32xf32>
    %279 = vector.shape_cast %278 : vector<8x8x32xf32> to vector<64x32xf32>
    %280 = arith.truncf %279 : vector<64x32xf32> to vector<64x32xbf16>
    %c0_79 = arith.constant 0 : index
    %c0_80 = arith.constant 0 : index
    %281 = vector.load %arg5[%c0_79, %c0_80] : memref<32x256xbf16, #tpu.memory_space<vmem>>, vector<32x256xbf16>
    %cst_81 = arith.constant dense<0.000000e+00> : vector<64x256xf32>
    %282 = tpu.matmul %280, %281, %cst_81 {dimension_numbers = #tpu.dot_dimension_numbers<[1], [0], [0], [1], [0, 0, 1, 1], [], []>} : vector<64x32xbf16>, vector<32x256xbf16>, vector<64x256xf32> -> vector<64x256xf32>
    %c0_82 = arith.constant 0 : index
    %c0_83 = arith.constant 0 : index
    %283 = vector.load %arg6[%c0_82, %c0_83] : memref<1x256xf32, #tpu.memory_space<vmem>>, vector<1x256xf32>
    %284 = vector.broadcast %283 : vector<1x256xf32> to vector<64x256xf32>
    %285 = arith.addf %282, %284 : vector<64x256xf32>
    %286 = math.tanh %285 : vector<64x256xf32>
    %c0_84 = arith.constant 0 : index
    %c0_85 = arith.constant 0 : index
    %287 = vector.load %arg7[%c0_84, %c0_85] : memref<1x256xf32, #tpu.memory_space<vmem>>, vector<1x256xf32>
    %288 = vector.broadcast %287 : vector<1x256xf32> to vector<64x256xf32>
    %289 = arith.mulf %286, %288 : vector<64x256xf32>
    %290 = arith.truncf %289 : vector<64x256xf32> to vector<64x256xbf16>
    %c0_86 = arith.constant 0 : index
    %c0_87 = arith.constant 0 : index
    %291 = vector.load %arg8[%c0_86, %c0_87] : memref<256x8xbf16, #tpu.memory_space<vmem>>, vector<256x8xbf16>
    %cst_88 = arith.constant dense<0.000000e+00> : vector<64x8xf32>
    %292 = tpu.matmul %290, %291, %cst_88 {dimension_numbers = #tpu.dot_dimension_numbers<[1], [0], [0], [1], [0, 0, 1, 1], [], []>} : vector<64x256xbf16>, vector<256x8xbf16>, vector<64x8xf32> -> vector<64x8xf32>
    %293 = vector.shape_cast %292 : vector<64x8xf32> to vector<8x8x8xf32>
    %cst_89 = arith.constant dense<0xFF800000> : vector<8x8xf32>
    %294 = vector.multi_reduction <maximumf>, %293, %cst_89 [0] : vector<8x8x8xf32> to vector<8x8xf32>
    %295 = vector.shape_cast %294 : vector<8x8xf32> to vector<1x8x8xf32>
    %296 = vector.broadcast %295 : vector<1x8x8xf32> to vector<8x8x8xf32>
    %297 = arith.subf %293, %296 : vector<8x8x8xf32>
    %298 = math.exp %297 : vector<8x8x8xf32>
    %cst_90 = arith.constant dense<0.000000e+00> : vector<8x8xf32>
    %299 = vector.multi_reduction <add>, %298, %cst_90 [0] : vector<8x8x8xf32> to vector<8x8xf32>
    %300 = vector.shape_cast %299 : vector<8x8xf32> to vector<1x8x8xf32>
    %301 = tpu.reciprocal %300 {approx = true} : vector<1x8x8xf32> -> vector<1x8x8xf32>
    %302 = vector.broadcast %301 : vector<1x8x8xf32> to vector<8x8x8xf32>
    %303 = arith.mulf %298, %302 : vector<8x8x8xf32>
    %c0_91 = arith.constant 0 : index
    %c0_92 = arith.constant 0 : index
    %304 = vector.load %arg9[%c0_91, %c0_92] : memref<1x8xf32, #tpu.memory_space<vmem>>, vector<1x8xf32>
    %305 = vector.shape_cast %304 : vector<1x8xf32> to vector<1x1x8xf32>
    %306 = vector.broadcast %305 : vector<1x1x8xf32> to vector<8x8x8xf32>
    %307 = arith.mulf %303, %306 : vector<8x8x8xf32>
    %cst_93 = arith.constant dense<0.000000e+00> : vector<8x8xf32>
    %308 = vector.multi_reduction <add>, %307, %cst_93 [2] : vector<8x8x8xf32> to vector<8x8xf32>
    %309 = vector.shape_cast %308 : vector<8x8xf32> to vector<8x8x1xf32>
    %310 = vector.broadcast %309 : vector<8x8x1xf32> to vector<8x8x32xf32>
    %311 = arith.mulf %310, %278 : vector<8x8x32xf32>
    %cst_94 = arith.constant dense<0.000000e+00> : vector<8x32xf32>
    %312 = vector.multi_reduction <add>, %311, %cst_94 [0] : vector<8x8x32xf32> to vector<8x32xf32>
    %c0_95 = arith.constant 0 : index
    %c0_96 = arith.constant 0 : index
    %313 = vector.load %arg10[%c0_95, %c0_96] : memref<8x64xf32, #tpu.memory_space<vmem>>, vector<8x32xf32>
    tpu.vector_store %arg10[%c0_95, %c0_96], %312 {strides = array<i32>} : memref<8x64xf32, #tpu.memory_space<vmem>>, vector<8x32xf32>,
    return
  }
}

</mosaic_0001>

<bundles_post_ra>
// kernel: tpu_custom_call.1
= control target key start
LH: loop header
LB: loop body
LE: loop exit
PB: predicated region body
PF: predicated region fallthrough
CT: control target
= control target key end

     0   :  { %v1758_v1 = vmov 0.0   ;;  %vm1759_vm0 = vmmov 0   ;;  %vm104_vm1 = vcmask 523264   ;;  %s1760_s28 = smov 64   ;;  %v1761_v9 = vmov 0   ;;  %s2240_s0 = inlined_call_operand.vmem [shape: bf16[8,8,64], index: 0, kind: input, shape index: {}]   ;;  %s2241_s1 = inlined_call_operand.vmem [shape: bf16[64,96], index: 1, kind: input, shape index: {}]   ;;  %s2242_s2 = inlined_call_operand.vmem [shape: f32[1,96], index: 2, kind: input, shape index: {}]   ;;  %s2243_s3 = inlined_call_operand.vmem [shape: bf16[32,96], index: 3, kind: input, shape index: {}]   ;;  %s2244_s4 = inlined_call_operand.vmem [shape: f32[1,32], index: 4, kind: input, shape index: {}]   ;;  %s2245_s5 = inlined_call_operand.vmem [shape: bf16[32,256], index: 5, kind: input, shape index: {}]   ;;  %s2246_s6 = inlined_call_operand.vmem [shape: f32[1,256], index: 6, kind: input, shape index: {}]   ;;  %s2247_s7 = inlined_call_operand.vmem [shape: f32[1,256], index: 7, kind: input, shape index: {}]   ;;  %s2248_s8 = inlined_call_operand.vmem [shape: bf16[256,8], index: 8, kind: input, shape index: {}]   ;;  %s2249_s9 = inlined_call_operand.vmem [shape: f32[1,8], index: 9, kind: input, shape index: {}]   ;;  %s2250_s10 = inlined_call_operand.hbm [shape: f32[8,64], index: 10, kind: output, shape index: {}]  }
   0x1   :  { %v1604_v0 = vld [vmem:[%s2241_s1] sm:$0xff]   ;;  %1518 = vmatprep.subr.bf16.mxu1 %v1758_v1  ;;  %v1606_v3 = vld [vmem:[%s2241_s1 + $0x8] sm:$0xff]   ;;  %1522 = vmatprep.mubr.msk.bf16.mxu1 %vm1759_vm0, %v1758_v1  ;;  %v1608_v5 = vld [vmem:[%s2241_s1 + $0x10] sm:$0xff]  }
   0x2   :  { %v1826_v2 = vld [vmem:[%s2243_s3] sm:$0xff]   ;;  %1502 = vmatprep.subr.bf16.mxu0 %v1604_v0  ;;  %v1837_v4 = vld [vmem:[%s2243_s3 + $0x8] sm:$0xff]   ;;  %v1609_v7 = vld [vmem:[%s2241_s1 + $0x18] sm:$0xff]  }
   0x3   :  { %1519 = vmatpush3.bf16.msra.mxu1 %v1826_v2  ;;  %1503 = vmatpush3.bf16.msra.mxu0 %v1604_v0  ;;  %v1610_v6 = vld [vmem:[%s2240_s0] sm:$0xff]   ;;  %v1611_v10 = vld [vmem:[%s2240_s0 + $0x8] sm:$0xff]  }
   0x4   :  { %1520 = vmatprep.subr.bf16.mxu1 %v1758_v1  ;;  %1504 = vmatprep.subr.bf16.mxu0 %v1606_v3  ;;  %v1387_v8 = vld [vmem:[%s2244_s4] ss:$0 sm:$0xff] }
   0x5   :  { %1510 = vmatprep.mubr.msk.bf16.mxu0 %vm104_vm1, %v1610_v6  ;;  %255 = vrot.lane.b32.xlu0 %v1387_v8, %s1760_s28 }
   0x7   :  { %1521 = vmatpush3.bf16.msra.mxu1 %v1837_v4  ;;  %1505 = vmatpush3.bf16.msra.mxu0 %v1606_v3 }
   0x8   :  { %1506 = vmatprep.subr.bf16.mxu0 %v1608_v5  ;;  %1526 = vmatprep.subr.bf16.mxu1 %v1758_v1 }
   0xa   :  { %1523 = vmatmul.mubr.bf16.vlgmr.msra.gmra.mrb[0].mxu1 %v1761_v9 }
   0xb   :  { %1507 = vmatpush3.bf16.msra.mxu0 %v1608_v5  ;;  %1527 = vmatpush3.bf16.msra.mxu1 %v1826_v2 }
   0xc   :  { %1508 = vmatprep.subr.bf16.mxu0 %v1609_v7  ;;  %1528 = vmatprep.subr.bf16.mxu1 %v1758_v1 }
   0xd   :  { %1530 = vmatprep.mubr.msk.bf16.mxu1 %vm1759_vm0, %v1758_v1 }
   0xf   :  { %1509 = vmatpush3.bf16.msra.mxu0 %v1609_v7  ;;  %1529 = vmatpush3.bf16.msra.mxu1 %v1837_v4 }
  0x10   :  { %1534 = vmatprep.subr.bf16.mxu1 %v1758_v1  ;;  %1542 = vmatprep.subr.bf16.mxu0 %v1758_v1 }
  0x12   :  { %1511 = vmatmul.mubr.msk.bf16.vlgmr.msra.gmra.mrb[0].mxu0 %vm104_vm1, %v1611_v10 }
  0x13   :  { %1543 = vmatpush3.bf16.msra.mxu0 %v1826_v2 }
  0x14   :  { %1544 = vmatprep.subr.bf16.mxu0 %v1758_v1 }
  0x15   :  { %15 = vsyncpa [#allocation4], 0  ;;  %v1883_v21 = vld [vmem:[%s2242_s2] ss:$0 sm:$0xff]  ;;  %s1762_s11 = smov 96   ;;  %vm204_vm2 = vcmask 261120  }
  0x16   :  { %vm282_vm3 = vcmask 130048   ;;  %vm285_vm4 = vcmask 261248   ;;  %vm853_vm5 = vcmask 523520   ;;  %vm1233_vm6 = vcmask 64512  }
  0x17   :  { %1545 = vmatpush3.bf16.msra.mxu0 %v1837_v4 }
  0x18   :  { %1558 = vmatprep.subr.bf16.mxu0 %v1758_v1 }
  0x77   :  { %v1872_v11 = vpop.permute.xlu0 %255 }
  0xdd   :  { %v242_v12 = vpop.f32.mrb[0].mxu1 }
  0xde   :  { %v258_v13 = vadd.f32 %v1872_v11, %v242_v12  ;;  %v1524_v14 = vpop.f32.mrb[1].mxu1 }
  0xdf   :  { %v245_v15 = vpop.f32.mrb[2].mxu1 }
  0xe0   :  { %260 = vrot.lane.b32.xlu0 %v258_v13, %s1760_s28  ;;  %v1525_v16 = vpop.f32.mrb[3].mxu1 }
  0xe5   :  { %v1876_v17 = vpop.f32.mrb[0].mxu0 }
  0xe6   :  { %v151_v18 = vpop.f32.mrb[1].mxu0  ;;  %v160_v7 = vadd.f32 %v1876_v17, %v1883_v21  ;;  %v1613_v17 = vld [vmem:[%s2240_s0 + $0x18] sm:$0xff]  }
  0xe7   :  { %v1878_v19 = vpop.f32.mrb[2].mxu0  ;;  %v152_v22 = vadd.f32 %v1883_v21, %v151_v18 }
  0xe8   :  { %v154_v20 = vpop.f32.mrb[3].mxu0 }
  0xe9   :  { %v248_v23 = vadd.f32 %v242_v12, %v152_v22  ;;  %v155_v45 = vadd.f32 %v1883_v21, %v154_v20 }
  0xeb   :  { %v1390_v24 = vmul.f32 -1.442695, %v248_v23 }
  0xed   :  { %1636 = vpow2.f32 %v1390_v24 }
  0xf7   :  { %v1637_v25 = vpop.eup %1636 }
  0xf8   :  { %v252_v26 = vadd.f32 1.0, %v1637_v25 }
  0xfa   :  { %1638 = vrcp.f32 %v252_v26 }
 0x104   :  { %v1639_v27 = vpop.eup %1638 }
 0x105   :  { %v270_v33 = vsub.f32 1.0, %v1639_v27  ;;  %v276_v35 = vmul.f32 0.0, %v1639_v27 }
 0x152   :  { %v261_v28 = vpop.permute.xlu0 %260 }
 0x153   :  { %v263_v29 = vmul.f32 %v1639_v27, %v261_v28 }
 0x155   :  { %265 = vrot.lane.b32.xlu1 %v263_v29, %s1760_s28 }
 0x1c7   :  { %v266_v30 = vpop.permute.xlu1 %265 }
 0x1c8   :  { %v268_v31 = vadd.f32 %v266_v30, %v152_v22  ;;  %v1612_v22 = vld [vmem:[%s2240_s0 + $0x10] sm:$0xff]  }
 0x1c9   :  { %1514 = vmatprep.mubr.msk.bf16.mxu0 %vm104_vm1, %v1612_v22 }
 0x1ca   :  { %1640 = vtanh.f32 %v268_v31  ;;  %1515 = vmatmul.mubr.msk.bf16.gmra.mrb[4].mxu0 %vm104_vm1, %v1613_v17 }
 0x1cb   :  { %1546 = vmatprep.mubr.msk.bf16.mxu0 %vm1759_vm0, %v1758_v1 }
 0x1d4   :  { %v1641_v32 = vpop.eup %1640 }
 0x1d5   :  { %272 = vrot.lane.b32.xlu1 %v1641_v32, %s1762_s11 }
 0x247   :  { %v273_v34 = vpop.permute.xlu1 %272 }
 0x248   :  { %v275_v36 = vmul.f32 %v273_v34, %v270_v33 }
 0x24a   :  { %v1888_v37 = vadd.f32 %v276_v35, %v275_v36 }
 0x24c   :  { %v287_v38 = vpack.c.bf16 %v1888_v37, %v1888_v37 }
 0x24e   :  { %289 = vrot.lane.b32.xlu0 %v287_v38, %s1762_s11 }
 0x29d   :  { %v1940_v30 = vpop.f32.mrb[4].mxu0 }
 0x29e   :  { %v167_v31 = vpop.f32.mrb[5].mxu0 }
 0x29f   :  { %v1942_v32 = vpop.f32.mrb[6].mxu0 }
 0x2a0   :  { %v1944_v33 = vpop.f32.mrb[7].mxu0 }
 0x2c0   :  { %v290_v39 = vpop.permute.xlu0 %289 }
 0x2c1   :  { %1531 = vmatmul.mubr.msk.bf16.vlgmr.msra.gmra.mrb[4].mxu1 %vm204_vm2, %v290_v39 }
 0x2c2   :  { %1535 = vmatpush3.bf16.msra.mxu1 %v1826_v2  ;;  %1538 = vmatprep.mubr.msk.bf16.mxu1 %vm1759_vm0, %v1758_v1 }
 0x2c3   :  { %1536 = vmatprep.subr.bf16.mxu1 %v1758_v1 }
 0x2c6   :  { %1537 = vmatpush3.bf16.msra.mxu1 %v1837_v4 }
 0x2c7   :  { %1550 = vmatprep.subr.bf16.mxu1 %v1758_v1 }
 0x394   :  { %v328_v40 = vpop.f32.mrb[4].mxu1 }
 0x395   :  { %v341_v41 = vadd.f32 %v328_v40, %v1872_v11  ;;  %v1532_v42 = vpop.f32.mrb[5].mxu1  ;;  %v334_v46 = vadd.f32 %v328_v40, %v155_v45 }
 0x396   :  { %v331_v43 = vpop.f32.mrb[6].mxu1 }
 0x397   :  { %343 = vrot.lane.b32.xlu1 %v341_v41, %s1760_s28  ;;  %v1533_v44 = vpop.f32.mrb[7].mxu1  ;;  %v1392_v47 = vmul.f32 -1.442695, %v334_v46  ;;  %v163_v41 = vadd.f32 %v1878_v19, %v1883_v21 }
 0x399   :  { %1642 = vpow2.f32 %v1392_v47 }
 0x3a3   :  { %v1643_v48 = vpop.eup %1642 }
 0x3a4   :  { %v338_v49 = vadd.f32 1.0, %v1643_v48 }
 0x3a6   :  { %1644 = vrcp.f32 %v338_v49 }
 0x3b0   :  { %v1645_v50 = vpop.eup %1644 }
 0x3b1   :  { %v353_v56 = vsub.f32 1.0, %v1645_v50  ;;  %v359_v58 = vmul.f32 %v1645_v50, %v1888_v37 }
 0x409   :  { %v344_v51 = vpop.permute.xlu1 %343 }
 0x40a   :  { %v346_v52 = vmul.f32 %v1645_v50, %v344_v51 }
 0x40c   :  { %348 = vrot.lane.b32.xlu0 %v346_v52, %s1760_s28 }
 0x47e   :  { %v349_v53 = vpop.permute.xlu0 %348 }
 0x47f   :  { %v351_v54 = vadd.f32 %v349_v53, %v155_v45 }
 0x481   :  { %1646 = vtanh.f32 %v351_v54 }
 0x48b   :  { %v1647_v55 = vpop.eup %1646 }
 0x48c   :  { %355 = vrot.lane.b32.xlu1 %v1647_v55, %s1762_s11 }
 0x4fe   :  { %v356_v57 = vpop.permute.xlu1 %355 }
 0x4ff   :  { %v358_v59 = vmul.f32 %v356_v57, %v353_v56 }
 0x501   :  { %v1906_v60 = vadd.f32 %v359_v58, %v358_v59 }
 0x503   :  { %v369_v61 = vpack.c.bf16 %v1906_v60, %v1906_v60 }
 0x505   :  { %371 = vrot.lane.b32.xlu0 %v369_v61, %s1762_s11 }
 0x577   :  { %v372_v62 = vpop.permute.xlu0 %371 }
 0x578   :  { %1539 = vmatmul.mubr.msk.bf16.vlgmr.msra.gmra.mrb[8].mxu1 %vm204_vm2, %v372_v62 }
 0x579   :  { %1551 = vmatpush3.bf16.msra.mxu1 %v1826_v2  ;;  %1554 = vmatprep.mubr.msk.bf16.mxu1 %vm1759_vm0, %v1758_v1 }
 0x57a   :  { %1552 = vmatprep.subr.bf16.mxu1 %v1758_v1 }
 0x57d   :  { %1553 = vmatpush3.bf16.msra.mxu1 %v1837_v4 }
 0x57e   :  { %1566 = vmatprep.subr.bf16.mxu1 %v1758_v1 }
 0x64b   :  { %v410_v63 = vpop.f32.mrb[8].mxu1 }
 0x64c   :  { %v423_v0 = vadd.f32 %v410_v63, %v1872_v11  ;;  %v1540_v3 = vpop.f32.mrb[9].mxu1  ;;  %v416_v8 = vadd.f32 %v410_v63, %v160_v7 }
 0x64d   :  { %v413_v5 = vpop.f32.mrb[10].mxu1 }
 0x64e   :  { %425 = vrot.lane.b32.xlu1 %v423_v0, %s1760_s28  ;;  %v1541_v6 = vpop.f32.mrb[11].mxu1  ;;  %v1394_v10 = vmul.f32 -1.442695, %v416_v8  ;;  %v168_v0 = vadd.f32 %v1883_v21, %v167_v31 }
 0x650   :  { %1648 = vpow2.f32 %v1394_v10 }
 0x65a   :  { %v1649_v12 = vpop.eup %1648 }
 0x65b   :  { %v420_v13 = vadd.f32 1.0, %v1649_v12 }
 0x65d   :  { %1650 = vrcp.f32 %v420_v13 }
 0x667   :  { %v1651_v14 = vpop.eup %1650 }
 0x668   :  { %v435_v24 = vsub.f32 1.0, %v1651_v14  ;;  %v441_v26 = vmul.f32 %v1651_v14, %v1906_v60 }
 0x6c0   :  { %v426_v15 = vpop.permute.xlu1 %425 }
 0x6c1   :  { %v428_v16 = vmul.f32 %v1651_v14, %v426_v15 }
 0x6c3   :  { %430 = vrot.lane.b32.xlu0 %v428_v16, %s1760_s28 }
 0x735   :  { %v431_v18 = vpop.permute.xlu0 %430 }
 0x736   :  { %v433_v20 = vadd.f32 %v431_v18, %v160_v7 }
 0x738   :  { %1652 = vtanh.f32 %v433_v20 }
 0x742   :  { %v1653_v23 = vpop.eup %1652 }
 0x743   :  { %437 = vrot.lane.b32.xlu1 %v1653_v23, %s1762_s11 }
 0x7b5   :  { %v438_v25 = vpop.permute.xlu1 %437 }
 0x7b6   :  { %v440_v27 = vmul.f32 %v438_v25, %v435_v24 }
 0x7b8   :  { %v1935_v28 = vadd.f32 %v441_v26, %v440_v27 }
 0x7ba   :  { %v451_v29 = vpack.c.bf16 %v1935_v28, %v1935_v28 }
 0x7bc   :  { %453 = vrot.lane.b32.xlu0 %v451_v29, %s1762_s11 }
 0x82e   :  { %v454_v34 = vpop.permute.xlu0 %453 }
 0x82f   :  { %1547 = vmatmul.mubr.msk.bf16.vlgmr.msra.gmra.mrb[8].mxu0 %vm204_vm2, %v454_v34  ;;  %v171_v34 = vadd.f32 %v1883_v21, %v1944_v33 }
 0x830   :  { %1559 = vmatpush3.bf16.msra.mxu0 %v1826_v2  ;;  %1562 = vmatprep.mubr.msk.bf16.mxu0 %vm1759_vm0, %v1758_v1 }
 0x831   :  { %1560 = vmatprep.subr.bf16.mxu0 %v1758_v1 }
 0x834   :  { %1561 = vmatpush3.bf16.msra.mxu0 %v1837_v4 }
 0x835   :  { %1574 = vmatprep.subr.bf16.mxu0 %v1758_v1 }
 0x902   :  { %v492_v35 = vpop.f32.mrb[8].mxu0 }
 0x903   :  { %v505_v36 = vadd.f32 %v492_v35, %v1872_v11  ;;  %v1548_v38 = vpop.f32.mrb[9].mxu0  ;;  %v498_v42 = vadd.f32 %v492_v35, %v163_v41 }
 0x904   :  { %v495_v39 = vpop.f32.mrb[10].mxu0 }
 0x905   :  { %507 = vrot.lane.b32.xlu1 %v505_v36, %s1760_s28  ;;  %v1549_v40 = vpop.f32.mrb[11].mxu0  ;;  %v1396_v43 = vmul.f32 -1.442695, %v498_v42 }
 0x907   :  { %1654 = vpow2.f32 %v1396_v43 }
 0x911   :  { %v1655_v44 = vpop.eup %1654 }
 0x912   :  { %v502_v45 = vadd.f32 1.0, %v1655_v44 }
 0x914   :  { %1656 = vrcp.f32 %v502_v45 }
 0x91e   :  { %v1657_v46 = vpop.eup %1656 }
 0x91f   :  { %v517_v52 = vsub.f32 1.0, %v1657_v46  ;;  %v523_v19 = vmul.f32 %v1657_v46, %v1935_v28 }
 0x977   :  { %v508_v47 = vpop.permute.xlu1 %507 }
 0x978   :  { %v510_v48 = vmul.f32 %v1657_v46, %v508_v47 }
 0x97a   :  { %512 = vrot.lane.b32.xlu0 %v510_v48, %s1760_s28 }
 0x9ec   :  { %v513_v49 = vpop.permute.xlu0 %512 }
 0x9ed   :  { %v515_v50 = vadd.f32 %v513_v49, %v163_v41 }
 0x9ef   :  { %1658 = vtanh.f32 %v515_v50 }
 0x9f9   :  { %v1659_v51 = vpop.eup %1658 }
 0x9fa   :  { %519 = vrot.lane.b32.xlu1 %v1659_v51, %s1762_s11 }
 0xa6c   :  { %v520_v53 = vpop.permute.xlu1 %519 }
 0xa6d   :  { %v522_v54 = vmul.f32 %v520_v53, %v517_v52 }
 0xa6f   :  { %v1960_v55 = vadd.f32 %v523_v19, %v522_v54  ;;  %v176_v19 = vadd.f32 %v1940_v30, %v1883_v21 }
 0xa71   :  { %v533_v56 = vpack.c.bf16 %v1960_v55, %v1960_v55 }
 0xa73   :  { %535 = vrot.lane.b32.xlu0 %v533_v56, %s1762_s11 }
 0xae5   :  { %v536_v57 = vpop.permute.xlu0 %535 }
 0xae6   :  { %1555 = vmatmul.mubr.msk.bf16.vlgmr.msra.gmra.mrb[12].mxu1 %vm204_vm2, %v536_v57 }
 0xae7   :  { %1567 = vmatpush3.bf16.msra.mxu1 %v1826_v2  ;;  %1570 = vmatprep.mubr.msk.bf16.mxu1 %vm1759_vm0, %v1758_v1 }
 0xae8   :  { %1568 = vmatprep.subr.bf16.mxu1 %v1758_v1 }
 0xaeb   :  { %1569 = vmatpush3.bf16.msra.mxu1 %v1837_v4 }
 0xbb9   :  { %v574_v58 = vpop.f32.mrb[12].mxu1 }
 0xbba   :  { %v587_v59 = vadd.f32 %v574_v58, %v1872_v11  ;;  %v1556_v61 = vpop.f32.mrb[13].mxu1  ;;  %v580_v3 = vadd.f32 %v574_v58, %v168_v0 }
 0xbbb   :  { %v577_v62 = vpop.f32.mrb[14].mxu1 }
 0xbbc   :  { %589 = vrot.lane.b32.xlu1 %v587_v59, %s1760_s28  ;;  %v1557_v63 = vpop.f32.mrb[15].mxu1  ;;  %v1398_v5 = vmul.f32 -1.442695, %v580_v3 }
 0xbbe   :  { %1660 = vpow2.f32 %v1398_v5 }
 0xbc8   :  { %v1661_v6 = vpop.eup %1660 }
 0xbc9   :  { %v584_v7 = vadd.f32 1.0, %v1661_v6 }
 0xbcb   :  { %1662 = vrcp.f32 %v584_v7 }
 0xbd5   :  { %v1663_v8 = vpop.eup %1662 }
 0xbd6   :  { %v599_v16 = vsub.f32 1.0, %v1663_v8  ;;  %v605_v20 = vmul.f32 %v1663_v8, %v1960_v55 }
 0xc2e   :  { %v590_v10 = vpop.permute.xlu1 %589 }
 0xc2f   :  { %v592_v12 = vmul.f32 %v1663_v8, %v590_v10 }
 0xc31   :  { %594 = vrot.lane.b32.xlu0 %v592_v12, %s1760_s28 }
 0xca3   :  { %v595_v13 = vpop.permute.xlu0 %594 }
 0xca4   :  { %v597_v14 = vadd.f32 %v595_v13, %v168_v0 }
 0xca6   :  { %1664 = vtanh.f32 %v597_v14 }
 0xcb0   :  { %v1665_v15 = vpop.eup %1664 }
 0xcb1   :  { %601 = vrot.lane.b32.xlu1 %v1665_v15, %s1762_s11 }
 0xd23   :  { %v602_v18 = vpop.permute.xlu1 %601 }
 0xd24   :  { %v604_v22 = vmul.f32 %v602_v18, %v599_v16 }
 0xd26   :  { %v1977_v17 = vadd.f32 %v605_v20, %v604_v22  ;;  %v179_v20 = vadd.f32 %v1942_v32, %v1883_v21 }
 0xd28   :  { %v613_v23 = vpack.c.bf16 %v1977_v17, %v1977_v17 }
 0xd2a   :  { %615 = vrot.lane.b32.xlu0 %v613_v23, %s1762_s11 }
 0xd9c   :  { %v616_v24 = vpop.permute.xlu0 %615 }
 0xd9d   :  { %1563 = vmatmul.mubr.msk.bf16.vlgmr.msra.gmra.mrb[12].mxu0 %vm204_vm2, %v616_v24 }
 0xd9e   :  { %1575 = vmatpush3.bf16.msra.mxu0 %v1826_v2  ;;  %1578 = vmatprep.mubr.msk.bf16.mxu0 %vm1759_vm0, %v1758_v1 }
 0xd9f   :  { %1576 = vmatprep.subr.bf16.mxu0 %v1758_v1 }
 0xda2   :  { %1577 = vmatpush3.bf16.msra.mxu0 %v1837_v4 }
 0xe70   :  { %v654_v25 = vpop.f32.mrb[12].mxu0 }
 0xe71   :  { %v667_v26 = vadd.f32 %v654_v25, %v1872_v11  ;;  %v1564_v27 = vpop.f32.mrb[13].mxu0  ;;  %v660_v35 = vadd.f32 %v654_v25, %v171_v34 }
 0xe72   :  { %v657_v29 = vpop.f32.mrb[14].mxu0 }
 0xe73   :  { %669 = vrot.lane.b32.xlu1 %v667_v26, %s1760_s28  ;;  %v1565_v31 = vpop.f32.mrb[15].mxu0  ;;  %v1400_v2 = vmul.f32 -1.442695, %v660_v35  ;;  %v1619_v35 = vld [vmem:[%s2245_s5 + $0x14] ss:$8 sps:$4 sm:$0xff]  }
 0xe75   :  { %1666 = vpow2.f32 %v1400_v2  ;;  %v1617_v2 = vld [vmem:[%s2245_s5 + $0x10] ss:$8 sps:$4 sm:$0xff]  }
 0xe7f   :  { %v1667_v36 = vpop.eup %1666 }
 0xe80   :  { %v664_v38 = vadd.f32 1.0, %v1667_v36 }
 0xe82   :  { %1668 = vrcp.f32 %v664_v38 }
 0xe8c   :  { %v1669_v1 = vpop.eup %1668 }
 0xe8d   :  { %v679_v43 = vsub.f32 1.0, %v1669_v1  ;;  %v685_v33 = vmul.f32 %v1669_v1, %v1977_v17 }
 0xee5   :  { %v670_v39 = vpop.permute.xlu1 %669 }
 0xee6   :  { %v672_v4 = vmul.f32 %v1669_v1, %v670_v39 }
 0xee8   :  { %674 = vrot.lane.b32.xlu0 %v672_v4, %s1760_s28 }
 0xf5a   :  { %v675_v40 = vpop.permute.xlu0 %674 }
 0xf5b   :  { %v677_v41 = vadd.f32 %v675_v40, %v171_v34  ;;  %v1620_v40 = vld [vmem:[%s2248_s8 + $0x40] sm:$0xff]  }
 0xf5c   :  { %1462 = vmatprep.subr.bf16.mxu0 %v1620_v40 }
 0xf5d   :  { %1670 = vtanh.f32 %v677_v41  ;;  %v1621_v41 = vld [vmem:[%s2248_s8] sm:$0xff]  }
 0xf67   :  { %v1671_v42 = vpop.eup %1670 }
 0xf68   :  { %681 = vrot.lane.b32.xlu1 %v1671_v42, %s1762_s11  ;;  %v1622_v42 = vld [vmem:[%s2248_s8 + $0x48] sm:$0xff]  }
 0xfda   :  { %v682_v44 = vpop.permute.xlu1 %681 }
 0xfdb   :  { %v684_v45 = vmul.f32 %v682_v44, %v679_v43  ;;  %v1624_v43 = vld [vmem:[%s2248_s8 + $0x50] sm:$0xff]  }
 0xfdc   :  { %v1625_v44 = vld [vmem:[%s2248_s8 + $0x10] sm:$0xff]  }
 0xfdd   :  { %v1995_v46 = vadd.f32 %v685_v33, %v684_v45 }
 0xfdf   :  { %v693_v47 = vpack.c.bf16 %v1995_v46, %v1995_v46 }
 0xfe1   :  { %695 = vrot.lane.b32.xlu0 %v693_v47, %s1762_s11 }
0x1053   :  { %v696_v48 = vpop.permute.xlu0 %695 }
0x1054   :  { %1571 = vmatmul.mubr.msk.bf16.vlgmr.msra.gmra.mrb[16].mxu1 %vm204_vm2, %v696_v48 }
0x1055   :  { %947 = vmatprep.mubr.bf16.mxu1 %v1761_v9 }
0x1127   :  { %v734_v49 = vpop.f32.mrb[16].mxu1 }
0x1128   :  { %v747_v50 = vadd.f32 %v734_v49, %v1872_v11  ;;  %v1572_v51 = vpop.f32.mrb[17].mxu1  ;;  %v740_v54 = vadd.f32 %v734_v49, %v176_v19 }
0x1129   :  { %v737_v52 = vpop.f32.mrb[18].mxu1 }
0x112a   :  { %749 = vrot.lane.b32.xlu1 %v747_v50, %s1760_s28  ;;  %v1573_v53 = vpop.f32.mrb[19].mxu1  ;;  %v1402_v56 = vmul.f32 -1.442695, %v740_v54 }
0x112c   :  { %1672 = vpow2.f32 %v1402_v56 }
0x1136   :  { %v1673_v57 = vpop.eup %1672 }
0x1137   :  { %v744_v58 = vadd.f32 1.0, %v1673_v57 }
0x1139   :  { %1674 = vrcp.f32 %v744_v58 }
0x1143   :  { %v1675_v59 = vpop.eup %1674 }
0x1144   :  { %v759_v5 = vsub.f32 1.0, %v1675_v59  ;;  %v765_v30 = vmul.f32 %v1675_v59, %v1995_v46 }
0x119c   :  { %v750_v61 = vpop.permute.xlu1 %749 }
0x119d   :  { %v752_v62 = vmul.f32 %v1675_v59, %v750_v61  ;;  %v1626_v61 = vld [vmem:[%s2248_s8 + $0x58] sm:$0xff]  }
0x119f   :  { %754 = vrot.lane.b32.xlu0 %v752_v62, %s1760_s28  ;;  %v1627_v62 = vld [vmem:[%s2248_s8 + $0x18] sm:$0xff]  }
0x1211   :  { %v755_v63 = vpop.permute.xlu0 %754 }
0x1212   :  { %v757_v0 = vadd.f32 %v755_v63, %v176_v19  ;;  %v1629_v63 = vld [vmem:[%s2248_s8 + $0x20] sm:$0xff]  }
0x1214   :  { %1676 = vtanh.f32 %v757_v0  ;;  %v1630_v0 = vld [vmem:[%s2248_s8 + $0x68] sm:$0xff]  }
0x121e   :  { %v1677_v3 = vpop.eup %1676 }
0x121f   :  { %761 = vrot.lane.b32.xlu1 %v1677_v3, %s1762_s11  ;;  %v1631_v3 = vld [vmem:[%s2248_s8 + $0x28] sm:$0xff]  }
0x1291   :  { %v762_v6 = vpop.permute.xlu1 %761 }
0x1292   :  { %v764_v7 = vmul.f32 %v762_v6, %v759_v5  ;;  %v1632_v5 = vld [vmem:[%s2248_s8 + $0x70] sm:$0xff]  }
0x1293   :  { %v1633_v6 = vld [vmem:[%s2248_s8 + $0x30] sm:$0xff]  }
0x1294   :  { %v766_v8 = vadd.f32 %v765_v30, %v764_v7  ;;  %v1634_v30 = vld [vmem:[%s2248_s8 + $0x78] sm:$0xff]  }
0x1295   :  { %v1635_v7 = vld [vmem:[%s2248_s8 + $0x38] sm:$0xff]  }
0x1296   :  { %v773_v10 = vpack.c.bf16 %v766_v8, %v766_v8 }
0x1298   :  { %775 = vrot.lane.b32.xlu0 %v773_v10, %s1762_s11 }
0x130a   :  { %v776_v12 = vpop.permute.xlu0 %775 }
0x130b   :  { %1579 = vmatmul.mubr.msk.bf16.vlgmr.msra.gmra.mrb[16].mxu0 %vm204_vm2, %v776_v12 }
0x130c   :  { %1463 = vmatpush3.bf16.msra.mxu0 %v1621_v41 }
0x130d   :  { %1464 = vmatprep.subr.bf16.mxu0 %v1622_v42 }
0x13de   :  { %v814_v13 = vpop.f32.mrb[16].mxu0 }
0x13df   :  { %v827_v14 = vadd.f32 %v814_v13, %v1872_v11  ;;  %v1580_v15 = vpop.f32.mrb[17].mxu0  ;;  %v820_v22 = vadd.f32 %v814_v13, %v179_v20  ;;  %v871_v13 = vld [vmem:[%s2246_s6] sm:$0x3] }
0x13e0   :  { %v817_v16 = vpop.f32.mrb[18].mxu0 }
0x13e1   :  { %829 = vrot.lane.b32.xlu1 %v827_v14, %s1760_s28  ;;  %v1581_v18 = vpop.f32.mrb[19].mxu0  ;;  %v1404_v23 = vmul.f32 -1.442695, %v820_v22 }
0x13e3   :  { %1678 = vpow2.f32 %v1404_v23 }
0x13ed   :  { %v1679_v24 = vpop.eup %1678 }
0x13ee   :  { %v824_v25 = vadd.f32 1.0, %v1679_v24 }
0x13f0   :  { %1680 = vrcp.f32 %v824_v25 }
0x13fa   :  { %v1681_v26 = vpop.eup %1680 }
0x13fb   :  { %v845_v38 = vmul.f32 %v1681_v26, %v766_v8 }
0x1453   :  { %v830_v27 = vpop.permute.xlu1 %829 }
0x1454   :  { %v832_v29 = vmul.f32 %v1681_v26, %v830_v27 }
0x1456   :  { %834 = vrot.lane.b32.xlu0 %v832_v29, %s1760_s28 }
0x145a   :  { %279 = vrot.lane.b32.xlu0 %v1888_v37, %s1762_s11 }
0x145e   :  { %768 = vrot.lane.b32.xlu0 %v766_v8, %s1762_s11  ;;  %v873_v8 = vlaneseq }
0x1460   :  { %v874_v10 = vshrl.u32 %v873_v8, 7 }
0x1462   :  { %444 = vrot.lane.b32.xlu0 %v1935_v28, %s1762_s11  ;;  %v1614_v28 = vld [vmem:[%s2245_s5] ss:$8 sps:$4 sm:$0xff]   ;;  %v875_v12 = vsub.s32 0, %v874_v10  ;;  %v879_v14 = vsub.s32 1, %v874_v10 }
0x1464   :  { %v2141_v15 = vrot.slane %v871_v13, %v875_v12  ;;  %v2143_v16 = vrot.slane %v871_v13, %v879_v14 }
0x1466   :  { %608 = vrot.lane.b32.xlu0 %v1977_v17, %s1762_s11  ;;  %v1616_v17 = vld [vmem:[%s2245_s5 + $0x4] ss:$8 sps:$4 sm:$0xff]  }
0x1467   :  { %915 = vmatprep.subr.bf16.mxu1 %v1616_v17 }
0x1468   :  { %916 = vmatpush1.bf16.msra.mxu1 %v1614_v28 }
0x1469   :  { %917 = vmatprep.subr.bf16.mxu1 %v1619_v35 }
0x146c   :  { %918 = vmatpush1.bf16.msra.mxu1 %v1617_v2 }
0x146d   :  { %1582 = vmatprep.subr.bf16.mxu1 %v1620_v40 }
0x14c8   :  { %v835_v11 = vpop.permute.xlu0 %834 }
0x14c9   :  { %v837_v21 = vadd.f32 %v835_v11, %v179_v20  ;;  %v1004_v11 = vld [vmem:[%s2247_s7] sm:$0x3] }
0x14ca   :  { %v2155_v17 = vrot.slane %v1004_v11, %v875_v12 }
0x14cb   :  { %1682 = vtanh.f32 %v837_v21 }
0x14cc   :  { %v280_v32 = vpop.permute.xlu0 %279 }
0x14cd   :  { %283 = vst.msk [vmem:[#allocation2] sm:$0xff] %vm282_vm3, %v280_v32 }
0x14ce   :  { %286 = vst.msk [vmem:[#allocation2 + $0x38] sm:$0xff] %vm285_vm4, %v280_v32 }
0x14d0   :  { %v769_v31 = vpop.permute.xlu0 %768 }
0x14d4   :  { %v445_v37 = vpop.permute.xlu0 %444 }
0x14d5   :  { %v1683_v34 = vpop.eup %1682  ;;  %448 = vst.msk [vmem:[#allocation2 + $0x10] sm:$0xff] %vm282_vm3, %v445_v37 }
0x14d6   :  { %450 = vst.msk [vmem:[#allocation2 + $0x28] sm:$0xff] %vm285_vm4, %v445_v37  ;;  %841 = vrot.lane.b32.xlu1 %v1683_v34, %s1762_s11 }
0x14da   :  { %362 = vrot.lane.b32.xlu1 %v1906_v60, %s1762_s11  ;;  %v839_v60 = vsub.f32 1.0, %v1681_v26 }
0x1548   :  { %v842_v36 = vpop.permute.xlu1 %841 }
0x1549   :  { %v844_v1 = vmul.f32 %v842_v36, %v839_v60  ;;  %v2158_v60 = vrot.slane %v1004_v11, %v879_v14 }
0x154b   :  { %v846_v39 = vadd.f32 %v845_v38, %v844_v1 }
0x154c   :  { %v363_v4 = vpop.permute.xlu1 %362 }
0x154d   :  { %366 = vst.msk [vmem:[#allocation2 + $0x8] sm:$0xff] %vm282_vm3, %v363_v4  ;;  %848 = vrot.lane.b32.xlu1 %v846_v39, %s1762_s11 }
0x154e   :  { %368 = vst.msk [vmem:[#allocation2 + $0x30] sm:$0xff] %vm285_vm4, %v363_v4  ;;  %772 = vst.msk [vmem:[#allocation2 + $0x8] sm:$0xff] %vm285_vm4, %v769_v31 }
0x154f   :  { %854 = vst.msk [vmem:[#allocation3] sm:$0xff] %vm853_vm5, %v846_v39 }
0x1550   :  { %771 = vst.msk [vmem:[#allocation2 + $0x30] sm:$0xff] %vm282_vm3, %v769_v31 }
0x1551   :  { %526 = vrot.lane.b32.xlu1 %v1960_v55, %s1762_s11  ;;  %v1623_v55 = vld [vmem:[%s2248_s8 + $0x8] sm:$0xff]  }
0x1552   :  { %1465 = vmatpush3.bf16.msra.mxu0 %v1623_v55 }
0x1553   :  { %1466 = vmatprep.subr.bf16.mxu0 %v1624_v43 }
0x1555   :  { %688 = vrot.lane.b32.xlu1 %v1995_v46, %s1762_s11  ;;  %v609_v46 = vpop.permute.xlu0 %608  ;;  %v2077_v49 = vld [vmem:[#allocation2 + $0x8] sm:$0xff] }
0x1556   :  { %1467 = vmatpush3.bf16.msra.mxu0 %v1625_v44 }
0x1557   :  { %v2103_v58 = vld [vmem:[#allocation2 + $0x30] sm:$0xff]  ;;  %1468 = vmatprep.subr.bf16.mxu0 %v1626_v61 }
0x155a   :  { %1469 = vmatpush3.bf16.msra.mxu0 %v1627_v62 }
0x15bf   :  { %v849_v33 = vpop.permute.xlu1 %848 }
0x15c0   :  { %851 = vst.msk [vmem:[#allocation2 + $0x38] sm:$0xff] %vm282_vm3, %v849_v33 }
0x15c1   :  { %852 = vst.msk [vmem:[#allocation2] sm:$0xff] %vm285_vm4, %v849_v33 }
0x15c3   :  { %v527_v45 = vpop.permute.xlu1 %526 }
0x15c4   :  { %530 = vst.msk [vmem:[#allocation2 + $0x18] sm:$0xff] %vm282_vm3, %v527_v45 }
0x15c5   :  { %532 = vst.msk [vmem:[#allocation2 + $0x20] sm:$0xff] %vm285_vm4, %v527_v45  ;;  %612 = vst.msk [vmem:[#allocation2 + $0x18] sm:$0xff] %vm285_vm4, %v609_v46 }
0x15c6   :  { %611 = vst.msk [vmem:[#allocation2 + $0x20] sm:$0xff] %vm282_vm3, %v609_v46 }
0x15c7   :  { %v689_v47 = vpop.permute.xlu1 %688  ;;  %v2101_v57 = vld [vmem:[#allocation2 + $0x38] sm:$0xff] }
0x15c8   :  { %v2075_v48 = vld [vmem:[#allocation2] sm:$0xff]  ;;  %691 = vst.msk [vmem:[#allocation2 + $0x28] sm:$0xff] %vm282_vm3, %v689_v47  ;;  %v866_v59 = vpack.c.bf16 %v2101_v57, %v2103_v58 }
0x15c9   :  { %692 = vst.msk [vmem:[#allocation2 + $0x10] sm:$0xff] %vm285_vm4, %v689_v47  ;;  %v863_v50 = vpack.c.bf16 %v2077_v49, %v2075_v48 }
0x15cb   :  { %1409 = vmatmul.mubr.msk.bf16.vlgmr.msra.gmra.mrb[20].mxu1 %vm204_vm2, %v863_v50 }
0x15cc   :  { %957 = vmatprep.mubr.bf16.mxu1 %v1761_v9  ;;  %1590 = vmatpush3.bf16.msra.mxu1 %v1621_v41  ;;  %v2087_v52 = vld [vmem:[#allocation2 + $0x18] sm:$0xff] }
0x15cd   :  { %1583 = vmatprep.subr.bf16.mxu1 %v1622_v42  ;;  %v2095_v54 = vld [vmem:[#allocation2 + $0x20] sm:$0xff] }
0x15cf   :  { %v2093_v19 = vld [vmem:[#allocation2 + $0x28] sm:$0xff] }
0x15d0   :  { %v2085_v51 = vld [vmem:[#allocation2 + $0x10] sm:$0xff]  ;;  %1591 = vmatpush3.bf16.msra.mxu1 %v1623_v55  ;;  %v865_v56 = vpack.c.bf16 %v2093_v19, %v2095_v54 }
0x15d1   :  { %v864_v53 = vpack.c.bf16 %v2087_v52, %v2085_v51  ;;  %1584 = vmatprep.subr.bf16.mxu1 %v1624_v43 }
0x15d3   :  { %1410 = vmatmul.mubr.msk.bf16.gmra.mrb[24].mxu1 %vm204_vm2, %v864_v53 }
0x15d4   :  { %967 = vmatprep.mubr.bf16.mxu1 %v1761_v9  ;;  %1592 = vmatpush3.bf16.msra.mxu1 %v1625_v44 }
0x15d5   :  { %1585 = vmatprep.subr.bf16.mxu1 %v1626_v61 }
0x15d8   :  { %1593 = vmatpush3.bf16.msra.mxu1 %v1627_v62 }
0x15db   :  { %1411 = vmatmul.mubr.msk.bf16.gmra.mrb[28].mxu1 %vm204_vm2, %v865_v56 }
0x15dc   :  { %977 = vmatprep.mubr.bf16.mxu1 %v1761_v9  ;;  %v1628_v9 = vld [vmem:[%s2248_s8 + $0x60] sm:$0xff]  }
0x15dd   :  { %1470 = vmatprep.subr.bf16.mxu0 %v1628_v9  ;;  %1586 = vmatprep.subr.bf16.mxu1 %v1628_v9 }
0x15de   :  { %1471 = vmatpush3.bf16.msra.mxu0 %v1629_v63  ;;  %1594 = vmatpush3.bf16.msra.mxu1 %v1629_v63 }
0x15df   :  { %1472 = vmatprep.subr.bf16.mxu0 %v1630_v0  ;;  %1587 = vmatprep.subr.bf16.mxu1 %v1630_v0 }
0x15e2   :  { %1473 = vmatpush3.bf16.msra.mxu0 %v1631_v3  ;;  %1595 = vmatpush3.bf16.msra.mxu1 %v1631_v3 }
0x15e3   :  { %1412 = vmatmul.mubr.msk.bf16.gmra.mrb[32].mxu1 %vm204_vm2, %v866_v59  ;;  %1474 = vmatprep.subr.bf16.mxu0 %v1632_v5 }
0x15e4   :  { %1588 = vmatprep.subr.bf16.mxu1 %v1632_v5 }
0x15e6   :  { %1475 = vmatpush3.bf16.msra.mxu0 %v1633_v6  ;;  %1596 = vmatpush3.bf16.msra.mxu1 %v1633_v6 }
0x15e7   :  { %1476 = vmatprep.subr.bf16.mxu0 %v1634_v30  ;;  %1589 = vmatprep.subr.bf16.mxu1 %v1634_v30 }
0x15ea   :  { %1477 = vmatpush3.bf16.msra.mxu0 %v1635_v7  ;;  %1597 = vmatpush3.bf16.msra.mxu1 %v1635_v7 }
0x169e   :  { %v949_v18 = vpop.f32.mrb[20].mxu1 }
0x169f   :  { %v950_v20 = vadd.f32 %v949_v18, %v2141_v15  ;;  %v951_v22 = vpop.f32.mrb[21].mxu1 }
0x16a0   :  { %v952_v23 = vadd.f32 %v951_v22, %v2143_v16  ;;  %v953_v24 = vpop.f32.mrb[22].mxu1 }
0x16a1   :  { %1684 = vtanh.f32 %v950_v20  ;;  %v954_v25 = vadd.f32 %v953_v24, %v2141_v15  ;;  %v955_v26 = vpop.f32.mrb[23].mxu1 }
0x16a2   :  { %1686 = vtanh.f32 %v952_v23  ;;  %v956_v27 = vadd.f32 %v955_v26, %v2143_v16 }
0x16a3   :  { %1688 = vtanh.f32 %v954_v25 }
0x16a4   :  { %1690 = vtanh.f32 %v956_v27 }
0x16a6   :  { %v959_v29 = vpop.f32.mrb[24].mxu1 }
0x16a7   :  { %v960_v21 = vadd.f32 %v959_v29, %v2141_v15  ;;  %v961_v32 = vpop.f32.mrb[25].mxu1 }
0x16a8   :  { %v962_v31 = vadd.f32 %v961_v32, %v2143_v16  ;;  %v963_v37 = vpop.f32.mrb[26].mxu1 }
0x16a9   :  { %1692 = vtanh.f32 %v960_v21  ;;  %v964_v34 = vadd.f32 %v963_v37, %v2141_v15  ;;  %v965_v28 = vpop.f32.mrb[27].mxu1 }
0x16aa   :  { %1694 = vtanh.f32 %v962_v31  ;;  %v966_v35 = vadd.f32 %v965_v28, %v2143_v16 }
0x16ab   :  { %v1685_v2 = vpop.eup %1684  ;;  %1696 = vtanh.f32 %v964_v34 }
0x16ac   :  { %v1687_v36 = vpop.eup %1686  ;;  %1698 = vtanh.f32 %v966_v35  ;;  %v1016_v4 = vmul.f32 %v1685_v2, %v2155_v17 }
0x16ad   :  { %v1689_v38 = vpop.eup %1688  ;;  %v1017_v55 = vmul.f32 %v1687_v36, %v2158_v60 }
0x16ae   :  { %v1691_v1 = vpop.eup %1690  ;;  %v969_v39 = vpop.f32.mrb[28].mxu1  ;;  %v1018_v40 = vmul.f32 %v1689_v38, %v2155_v17 }
0x16af   :  { %v970_v41 = vadd.f32 %v969_v39, %v2141_v15  ;;  %v971_v42 = vpop.f32.mrb[29].mxu1  ;;  %v1019_v43 = vmul.f32 %v1691_v1, %v2158_v60 }
0x16b0   :  { %v972_v44 = vadd.f32 %v971_v42, %v2143_v16  ;;  %v973_v33 = vpop.f32.mrb[30].mxu1  ;;  %v1032_v45 = vpack.c.bf16 %v1018_v40, %v1016_v4 }
0x16b1   :  { %1700 = vtanh.f32 %v970_v41  ;;  %v974_v46 = vadd.f32 %v973_v33, %v2141_v15  ;;  %v975_v47 = vpop.f32.mrb[31].mxu1  ;;  %v1033_v50 = vpack.c.bf16 %v1019_v43, %v1017_v55 }
0x16b2   :  { %1702 = vtanh.f32 %v972_v44  ;;  %v976_v53 = vadd.f32 %v975_v47, %v2143_v16 }
0x16b3   :  { %v1693_v56 = vpop.eup %1692  ;;  %1704 = vtanh.f32 %v974_v46  ;;  %1200 = vmatprep.mubr.bf16.mxu0 %v1033_v50 }
0x16b4   :  { %v1695_v59 = vpop.eup %1694  ;;  %1706 = vtanh.f32 %v976_v53  ;;  %1201 = vmatmul.mubr.bf16.vlgmr.msra.gmra.mrb[20].mxu0 %v1032_v45  ;;  %v1020_v63 = vmul.f32 %v1693_v56, %v2155_v17 }
0x16b5   :  { %v1697_v61 = vpop.eup %1696  ;;  %v1021_v6 = vmul.f32 %v1695_v59, %v2158_v60 }
0x16b6   :  { %v1699_v62 = vpop.eup %1698  ;;  %v979_v9 = vpop.f32.mrb[32].mxu1  ;;  %v1022_v0 = vmul.f32 %v1697_v61, %v2155_v17 }
0x16b7   :  { %v980_v3 = vadd.f32 %v979_v9, %v2141_v15  ;;  %v981_v5 = vpop.f32.mrb[33].mxu1  ;;  %v1023_v30 = vmul.f32 %v1699_v62, %v2158_v60 }
0x16b8   :  { %v982_v7 = vadd.f32 %v981_v5, %v2143_v16  ;;  %v983_v8 = vpop.f32.mrb[34].mxu1  ;;  %v1034_v10 = vpack.c.bf16 %v1022_v0, %v1020_v63 }
0x16b9   :  { %1708 = vtanh.f32 %v980_v3  ;;  %v984_v12 = vadd.f32 %v983_v8, %v2141_v15  ;;  %v985_v13 = vpop.f32.mrb[35].mxu1  ;;  %v1035_v14 = vpack.c.bf16 %v1023_v30, %v1021_v6 }
0x16ba   :  { %1710 = vtanh.f32 %v982_v7  ;;  %v986_v18 = vadd.f32 %v985_v13, %v2143_v16 }
0x16bb   :  { %v1701_v20 = vpop.eup %1700  ;;  %1712 = vtanh.f32 %v984_v12  ;;  %1208 = vmatprep.mubr.bf16.mxu0 %v1035_v14 }
0x16bc   :  { %v1703_v22 = vpop.eup %1702  ;;  %1714 = vtanh.f32 %v986_v18  ;;  %1209 = vmatmul.mubr.bf16.gmra.mrb[24].mxu0 %v1034_v10  ;;  %v1024_v25 = vmul.f32 %v1701_v20, %v2155_v17 }
0x16bd   :  { %v1705_v23 = vpop.eup %1704  ;;  %v1025_v27 = vmul.f32 %v1703_v22, %v2158_v60 }
0x16be   :  { %v1707_v24 = vpop.eup %1706  ;;  %v1026_v26 = vmul.f32 %v1705_v23, %v2155_v17 }
0x16bf   :  { %v1027_v15 = vmul.f32 %v1707_v24, %v2158_v60 }
0x16c0   :  { %v1036_v29 = vpack.c.bf16 %v1026_v26, %v1024_v25 }
0x16c1   :  { %v1037_v11 = vpack.c.bf16 %v1027_v15, %v1025_v27 }
0x16c3   :  { %v1709_v21 = vpop.eup %1708  ;;  %1216 = vmatprep.mubr.bf16.mxu1 %v1037_v11 }
0x16c4   :  { %v1711_v16 = vpop.eup %1710  ;;  %1217 = vmatmul.mubr.bf16.vlgmr.msra.gmra.mrb[36].mxu1 %v1036_v29  ;;  %v1028_v37 = vmul.f32 %v1709_v21, %v2155_v17 }
0x16c5   :  { %v1713_v32 = vpop.eup %1712  ;;  %v1029_v28 = vmul.f32 %v1711_v16, %v2158_v60 }
0x16c6   :  { %v1715_v31 = vpop.eup %1714  ;;  %v1030_v34 = vmul.f32 %v1713_v32, %v2155_v17 }
0x16c7   :  { %v1031_v35 = vmul.f32 %v1715_v31, %v2158_v60 }
0x16c8   :  { %v1038_v2 = vpack.c.bf16 %v1030_v34, %v1028_v37 }
0x16c9   :  { %v1039_v36 = vpack.c.bf16 %v1031_v35, %v1029_v28 }
0x16cb   :  { %1224 = vmatprep.mubr.bf16.mxu1 %v1039_v36 }
0x16cc   :  { %1225 = vmatmul.mubr.bf16.gmra.mrb[40].mxu1 %v1038_v2 }
0x1787   :  { %v1478_v38 = vpop.f32.mrb[20].mxu0 }
0x1788   :  { %v1479_v1 = vpop.f32.mrb[21].mxu0 }
0x1789   :  { %v1480_v39 = vadd.f32 %v1479_v1, %v1478_v38  ;;  %v1481_v4 = vpop.f32.mrb[22].mxu0 }
0x178a   :  { %v1482_v40 = vpop.f32.mrb[23].mxu0 }
0x178b   :  { %v1483_v41 = vadd.f32 %v1482_v40, %v1481_v4  ;;  %v1234_v53 = vsel %vm1233_vm6, %v1480_v39, -inf }
0x178d   :  { %v1235_v62 = vsel %vm1233_vm6, %v1483_v41, -inf }
0x178f   :  { %v1484_v42 = vpop.f32.mrb[24].mxu0 }
0x1790   :  { %v1485_v55 = vpop.f32.mrb[25].mxu0 }
0x1791   :  { %v1486_v43 = vadd.f32 %v1485_v55, %v1484_v42  ;;  %v1487_v44 = vpop.f32.mrb[26].mxu0 }
0x1792   :  { %v1488_v33 = vpop.f32.mrb[27].mxu0 }
0x1793   :  { %v1489_v17 = vadd.f32 %v1488_v33, %v1487_v44  ;;  %v1236_v8 = vsel %vm1233_vm6, %v1486_v43, -inf }
0x1795   :  { %v1237_v14 = vsel %vm1233_vm6, %v1489_v17, -inf }
0x1797   :  { %v1490_v45 = vpop.f32.mrb[36].mxu1 }
0x1798   :  { %v1491_v46 = vpop.f32.mrb[37].mxu1 }
0x1799   :  { %v1492_v60 = vadd.f32 %v1491_v46, %v1490_v45  ;;  %v1493_v47 = vpop.f32.mrb[38].mxu1 }
0x179a   :  { %v1494_v50 = vpop.f32.mrb[39].mxu1 }
0x179b   :  { %v1238_v56 = vsel %vm1233_vm6, %v1492_v60, -inf  ;;  %v1495_v59 = vadd.f32 %v1494_v50, %v1493_v47 }
0x179c   :  { %v1239_v61 = vmax.f32 %v1234_v53, %v1238_v56 }
0x179d   :  { %v1240_v9 = vsel %vm1233_vm6, %v1495_v59, -inf }
0x179e   :  { %v1241_v63 = vmax.f32 %v1235_v62, %v1240_v9 }
0x179f   :  { %v1496_v0 = vpop.f32.mrb[40].mxu1 }
0x17a0   :  { %v1246_v3 = vmax.f32 %v1239_v61, %v1241_v63  ;;  %v1497_v5 = vpop.f32.mrb[41].mxu1  ;;  %v1429_v63 = vld [vmem:[%s2249_s9] ss:$0 sm:$0xff]  ;;  %s1763_s9 = smov [#allocation3]  }
0x17a1   :  { %v1498_v6 = vadd.f32 %v1497_v5, %v1496_v0  ;;  %v1499_v30 = vpop.f32.mrb[42].mxu1  ;;  %s1366_s1 = sshll.u32 %s1763_s9, 4  ;;  %s1367_s1 = int_to_ptr.vmem [resolvable:$true] %s1366_s1 }
0x17a2   :  { %v1500_v7 = vpop.f32.mrb[43].mxu1  ;;  %s1734_s29 = scalar_lea.vmem %s1367_s1, 128  ;;  %p1739_p1 = scmp.lt.s32.totalorder %s1367_s1, %s1367_s1 }
0x17a3   :  { %v1242_v10 = vsel %vm1233_vm6, %v1498_v6, -inf  ;;  %v1501_v12 = vadd.f32 %v1500_v7, %v1499_v30  ;;  %p1735_p0 = scmp.ne.s32.totalorder %s1367_s1, %s1734_s29  ;;  %p1740_p2 = scmp.lt.s32.totalorder %s1734_s29, %s1734_s29 }
0x17a4   :  { %v1243_v13 = vmax.f32 %v1236_v8, %v1242_v10 }
0x17a5   :  { %v1244_v18 = vsel %vm1233_vm6, %v1501_v12, -inf  ;;  %p1741_p3 = por %p1740_p2, %p1739_p1 }
0x17a6   :  { %v1245_v20 = vmax.f32 %v1237_v14, %v1244_v18 }
0x17a7   :  { %p1742_p4 = pnand %p1741_p3, %p1735_p0 }
0x17a8   :  { %v1247_v22 = vmax.f32 %v1243_v13, %v1245_v20 }
0x17aa   :  { %v1248_v23 = vmax.f32 %v1246_v3, %v1247_v22 }
0x17ac   :  { %v1249_v24 = vsub.f32 %v1480_v39, %v1248_v23  ;;  %v1250_v25 = vsub.f32 %v1483_v41, %v1248_v23  ;;  %v1251_v26 = vsub.f32 %v1486_v43, %v1248_v23  ;;  %v1252_v27 = vsub.f32 %v1489_v17, %v1248_v23 }
0x17ad   :  { %v1253_v15 = vsub.f32 %v1492_v60, %v1248_v23  ;;  %v1254_v29 = vsub.f32 %v1495_v59, %v1248_v23  ;;  %v1255_v11 = vsub.f32 %v1498_v6, %v1248_v23  ;;  %v1256_v21 = vsub.f32 %v1501_v12, %v1248_v23 }
0x17ae   :  { %v1257_v16 = vmul.f32 1.442695, %v1249_v24  ;;  %v1259_v32 = vmul.f32 1.442695, %v1250_v25  ;;  %v1261_v31 = vmul.f32 1.442695, %v1251_v26 }
0x17af   :  { %v1263_v37 = vmul.f32 1.442695, %v1252_v27  ;;  %v1265_v34 = vmul.f32 1.442695, %v1253_v15  ;;  %v1267_v28 = vmul.f32 1.442695, %v1254_v29 }
0x17b0   :  { %1716 = vpow2.f32 %v1257_v16  ;;  %v1269_v35 = vmul.f32 1.442695, %v1255_v11  ;;  %v1271_v2 = vmul.f32 1.442695, %v1256_v21 }
0x17b1   :  { %1718 = vpow2.f32 %v1259_v32 }
0x17b2   :  { %1720 = vpow2.f32 %v1261_v31 }
0x17b3   :  { %1722 = vpow2.f32 %v1263_v37 }
0x17b4   :  { %1724 = vpow2.f32 %v1265_v34 }
0x17b5   :  { %1726 = vpow2.f32 %v1267_v28 }
0x17b6   :  { %1728 = vpow2.f32 %v1269_v35 }
0x17b7   :  { %1730 = vpow2.f32 %v1271_v2 }
0x17ba   :  { %v1717_v36 = vpop.eup %1716 }
0x17bb   :  { %v1719_v38 = vpop.eup %1718  ;;  %v1273_v1 = vsel %vm1233_vm6, %v1717_v36, 0.0 }
0x17bc   :  { %v1721_v39 = vpop.eup %1720  ;;  %v1274_v4 = vsel %vm1233_vm6, %v1719_v38, 0.0 }
0x17bd   :  { %v1723_v40 = vpop.eup %1722  ;;  %v1275_v41 = vadd.f32 %v1274_v4, %v1273_v1  ;;  %v1276_v42 = vsel %vm1233_vm6, %v1721_v39, 0.0 }
0x17be   :  { %v1725_v55 = vpop.eup %1724  ;;  %v1278_v44 = vsel %vm1233_vm6, %v1723_v40, 0.0 }
0x17bf   :  { %v1277_v43 = vadd.f32 %v1276_v42, %v1275_v41  ;;  %v1727_v33 = vpop.eup %1726  ;;  %v1280_v45 = vsel %vm1233_vm6, %v1725_v55, 0.0 }
0x17c0   :  { %v1729_v46 = vpop.eup %1728  ;;  %v1282_v47 = vsel %vm1233_vm6, %v1727_v33, 0.0 }
0x17c1   :  { %v1279_v17 = vadd.f32 %v1278_v44, %v1277_v43  ;;  %v1731_v50 = vpop.eup %1730  ;;  %v1284_v56 = vsel %vm1233_vm6, %v1729_v46, 0.0 }
0x17c2   :  { %v1286_v61 = vsel %vm1233_vm6, %v1731_v50, 0.0 }
0x17c3   :  { %v1281_v60 = vadd.f32 %v1280_v45, %v1279_v17 }
0x17c5   :  { %v1283_v53 = vadd.f32 %v1282_v47, %v1281_v60 }
0x17c7   :  { %v1285_v59 = vadd.f32 %v1284_v56, %v1283_v53 }
0x17c9   :  { %v1287_v62 = vadd.f32 %v1286_v61, %v1285_v59 }
0x17cb   :  { %1732 = vrcp.f32 %v1287_v62 }
0x17d5   :  { %v1733_v9 = vpop.eup %1732 }
0x17d6   :  { %v1290_v0 = vmul.f32 %v1733_v9, %v1719_v38  ;;  %v1289_v3 = vmul.f32 %v1733_v9, %v1717_v36  ;;  %v1293_v5 = vmul.f32 %v1733_v9, %v1725_v55  ;;  %v1291_v6 = vmul.f32 %v1733_v9, %v1721_v39 }
0x17d7   :  { %v1295_v30 = vmul.f32 %v1733_v9, %v1729_v46  ;;  %v1292_v7 = vmul.f32 %v1733_v9, %v1723_v40  ;;  %v1294_v8 = vmul.f32 %v1733_v9, %v1727_v33  ;;  %v1296_v10 = vmul.f32 %v1733_v9, %v1731_v50 }
0x17d8   :  { %v1305_v12 = vmul.f32 %v1429_v63, %v1290_v0  ;;  %v1304_v13 = vmul.f32 %v1429_v63, %v1289_v3  ;;  %v1308_v20 = vmul.f32 %v1429_v63, %v1293_v5  ;;  %v1306_v22 = vmul.f32 %v1429_v63, %v1291_v6 }
0x17d9   :  { %v1310_v25 = vmul.f32 %v1429_v63, %v1295_v30  ;;  %v1307_v26 = vmul.f32 %v1429_v63, %v1292_v7  ;;  %v1309_v29 = vmul.f32 %v1429_v63, %v1294_v8  ;;  %v1311_v21 = vmul.f32 %v1429_v63, %v1296_v10 }
0x17da   :  { %v1315_v14 = vsel %vm1233_vm6, %v1305_v12, 0.0  ;;  %v1312_v18 = vsel %vm1233_vm6, %v1304_v13, 0.0  ;;  %v1324_v23 = vsel %vm1233_vm6, %v1308_v20, 0.0  ;;  %v1318_v24 = vsel %vm1233_vm6, %v1306_v22, 0.0 }
0x17db   :  { %1316 = vadd.xlane.f32.xlu1 %v1315_v14  ;;  %1313 = vadd.xlane.f32.xlu0 %v1312_v18  ;;  %v1330_v27 = vsel %vm1233_vm6, %v1310_v25, 0.0  ;;  %v1321_v15 = vsel %vm1233_vm6, %v1307_v26, 0.0  ;;  %v1327_v11 = vsel %vm1233_vm6, %v1309_v29, 0.0  ;;  %v1333_v16 = vsel %vm1233_vm6, %v1311_v21, 0.0 }
0x17df   :  { %1325 = vadd.xlane.f32.xlu1 %v1324_v23  ;;  %1319 = vadd.xlane.f32.xlu0 %v1318_v24 }
0x17e3   :  { %1331 = vadd.xlane.f32.xlu1 %v1330_v27  ;;  %1322 = vadd.xlane.f32.xlu0 %v1321_v15 }
0x17e7   :  { %1328 = vadd.xlane.f32.xlu0 %v1327_v11 }
0x17eb   :  { %1334 = vadd.xlane.f32.xlu0 %v1333_v16 }
0x1868   :  { %v1317_v32 = vpop.xlane.xlu1 %1316  ;;  %v1314_v31 = vpop.xlane.xlu0 %1313 }
0x1869   :  { %v1337_v37 = vmul.f32 %v1317_v32, %v2077_v49  ;;  %v1336_v34 = vmul.f32 %v1314_v31, %v2075_v48 }
0x186b   :  { %v1345_v2 = vsel %vm204_vm2, %v1337_v37, 0.0  ;;  %v1344_v36 = vsel %vm204_vm2, %v1336_v34, 0.0 }
0x186c   :  { %v1326_v28 = vpop.xlane.xlu1 %1325  ;;  %v1320_v35 = vpop.xlane.xlu0 %1319  ;;  %v1346_v39 = vadd.f32 %v1345_v2, %v1344_v36 }
0x186d   :  { %v1338_v38 = vmul.f32 %v1320_v35, %v2085_v51  ;;  %v1340_v40 = vmul.f32 %v1326_v28, %v2095_v54 }
0x186f   :  { %v1347_v1 = vsel %vm204_vm2, %v1338_v38, 0.0  ;;  %v1351_v44 = vsel %vm204_vm2, %v1340_v40, 0.0 }
0x1870   :  { %v1323_v4 = vpop.xlane.xlu0 %1322  ;;  %v1348_v42 = vadd.f32 %v1347_v1, %v1346_v39  ;;  %v1332_v49 = vpop.xlane.xlu1 %1331 }
0x1871   :  { %v1339_v41 = vmul.f32 %v1323_v4, %v2087_v52  ;;  %v1342_v33 = vmul.f32 %v1332_v49, %v2103_v58 }
0x1873   :  { %v1349_v48 = vsel %vm204_vm2, %v1339_v41, 0.0  ;;  %v1355_v54 = vsel %vm204_vm2, %v1342_v33, 0.0 }
0x1874   :  { %v1350_v55 = vadd.f32 %v1349_v48, %v1348_v42  ;;  %v1329_v43 = vpop.xlane.xlu0 %1328 }
0x1875   :  { %v1341_v51 = vmul.f32 %v1329_v43, %v2093_v19 }
0x1876   :  { %v1352_v17 = vadd.f32 %v1351_v44, %v1350_v55 }
0x1877   :  { %v1353_v45 = vsel %vm204_vm2, %v1341_v51, 0.0 }
0x1878   :  { %v1354_v46 = vadd.f32 %v1353_v45, %v1352_v17  ;;  %v1335_v60 = vpop.xlane.xlu0 %1334 }
0x1879   :  { %v1343_v52 = vmul.f32 %v1335_v60, %v2101_v57 }
0x187a   :  { %v1356_v47 = vadd.f32 %v1355_v54, %v1354_v46 }
0x187b   :  { %v1357_v50 = vsel %vm204_vm2, %v1343_v52, 0.0 }
0x187c   :  { %v1358_v53 = vadd.f32 %v1357_v50, %v1356_v47 }
0x187e   :  { %1359 = vst.msk [vmem:[#allocation3] sm:$0xff] %vm204_vm2, %v1358_v53 }
0x187f   :  { %1745 = shalt.err (!%p1742_p4)
}
0x1880   :  { %s1746_s11 = scalar_lea.hbm %s2250_s10, 128 }
0x1881   :  { %p1747_p5 = scmp.ne.s32.totalorder %s2250_s10, %s1746_s11  ;;  %p1750_p6 = scmp.lt.u32.totalorder %s1746_s11, %s2250_s10 }
0x1883   :  { %p1752_p7 = pnand %p1750_p6, %p1747_p5 }
0x1885   :  { %1755 = shalt.err (!%p1752_p7)
}
0x1886   :  { %1369 = dma.vmem_to_hbm [thread:$0]  %s1367_s1, 128, %s2250_s10, [#allocation4]  }
0x1887   :  { %1756 = dma.done.wait [#allocation4], 128  }
0x1888   :  { %1757 = vsyncadd [#allocation4], 4294967168 }
0x1889   :  { %1373 = vsyncpa [#allocation4], 1 }

</bundles_post_ra>
